<compile_context>
chip_gen: v7x
topology: tpu7x:2x2x1
jax: 0.10.0
libtpu: 0.0.40
codegen_flags: <defaults>
</compile_context>

<pallas_src>
import jax
import jax.numpy as jnp
from jax.experimental import pallas as pl
from jax.experimental.pallas import tpu as pltpu


def _disc_kernel(x_ref,                      # (KP, TB)   f32   [x^T ; 1 ; 0...]
                 w1_ref,                     # (512, KP)  bf16  [W1 | b1 | 0...]
                 w2_ref, b2_ref,             # (256, 512) bf16, (256, 1) f32
                 w3_ref, b3_ref,             # (128, 256) bf16, (128, 1) f32
                 w4_ref, b4_ref,             # (1, 128)   bf16, (1, 1)   f32
                 o_ref):                     # (1, TB)    f32
    # ---- Layer 1 on the MXU (K padded to 16, bias folded into the matmul).
    xb = x_ref[...].astype(jnp.bfloat16)                              # (KP, TB)
    h = jnp.dot(w1_ref[...], xb, preferred_element_type=jnp.float32)  # (512, TB) f32
    h = jnp.maximum(h, 0.0).astype(jnp.bfloat16)                      # fused ReLU + bf16 store

    # ---- Layer 2: bf16 in, f32 accumulate; fused bias+ReLU+cast epilogue.
    h = jnp.dot(w2_ref[...], h, preferred_element_type=jnp.float32)   # (256, TB) f32
    h = jnp.maximum(h + b2_ref[...], 0.0).astype(jnp.bfloat16)

    # ---- Layer 3.
    h = jnp.dot(w3_ref[...], h, preferred_element_type=jnp.float32)   # (128, TB) f32
    h = jnp.maximum(h + b3_ref[...], 0.0).astype(jnp.bfloat16)

    # ---- Layer 4: (1,128) @ (128,TB) -> lane-dense (1, TB) output tile.
    out = jnp.dot(w4_ref[...], h, preferred_element_type=jnp.float32)
    o_ref[...] = (out + b4_ref[...]).astype(o_ref.dtype)


def _round_up(n, m):
    return ((n + m - 1) // m) * m


def _choose_tb(batch, tb):
    """Batch tile: multiple of 128, amortizes per-step overhead, but keeps the
    grid at >= 2 steps when possible so both v7x TensorCores get work."""
    tb = max(128, _round_up(tb, 128))
    b128 = _round_up(batch, 128)
    if b128 >= 256:
        tb = min(tb, _round_up(b128 // 2, 128))
    return min(tb, b128)


def init_params(key, input_dim=3):
    """Deterministic synthetic init matching torch.nn.Linear shapes/scales.
    Weights in PyTorch (out, in) layout; biases (out,)."""
    dims = [(input_dim, 512), (512, 256), (256, 128), (128, 1)]
    params = []
    for fan_in, fan_out in dims:
        key, kw, kb = jax.random.split(key, 3)
        bound = 1.0 / (fan_in ** 0.5)
        w = jax.random.uniform(kw, (fan_out, fan_in), jnp.float32, -bound, bound)
        b = jax.random.uniform(kb, (fan_out,), jnp.float32, -bound, bound)
        params.append((w, b))
    return params


def prepare_disc_params(params):
    """One-time packing: cast to bf16, reshape biases, fold b1 into a padded W1."""
    (w1, b1), (w2, b2), (w3, b3), (w4, b4) = params
    out1, f_in = w1.shape
    kp = _round_up(f_in + 1, 16)                       # pad K (3 -> 16) for bf16 MXU
    w1p = jnp.zeros((out1, kp), jnp.float32)
    w1p = w1p.at[:, :f_in].set(w1).at[:, f_in].set(b1)  # bias column vs ones-row of x^T
    return {
        "w1": w1p.astype(jnp.bfloat16),
        "w2": w2.astype(jnp.bfloat16),
        "b2": b2.reshape(-1, 1).astype(jnp.float32),
        "w3": w3.astype(jnp.bfloat16),
        "b3": b3.reshape(-1, 1).astype(jnp.float32),
        "w4": w4.astype(jnp.bfloat16),
        "b4": b4.reshape(-1, 1).astype(jnp.float32),
    }


def discriminator_forward(x, prepped, tb=2048):
    """x: (B, input_dim) float32. prepped: output of prepare_disc_params."""
    B, F = x.shape
    KP = prepped["w1"].shape[1]

    TB = _choose_tb(B, tb)
    Bp = _round_up(B, TB)
    grid = (Bp // TB,)

    # Lane-dense transposed input with a constant-1 row (for the folded b1),
    # built as one concat + one zero-pad: (KP, Bp).
    xt = jnp.concatenate(
        [x.T.astype(jnp.float32), jnp.ones((1, B), jnp.float32)], axis=0)
    xt = jnp.pad(xt, ((0, KP - (F + 1)), (0, Bp - B)))

    flat = [xt, prepped["w1"],
            prepped["w2"], prepped["b2"],
            prepped["w3"], prepped["b3"],
            prepped["w4"], prepped["b4"]]

    in_specs = [pl.BlockSpec((KP, TB), lambda i: (0, i))]           # batch-tiled input
    in_specs += [pl.BlockSpec(a.shape, lambda i: (0, 0))            # VMEM-resident params
                 for a in flat[1:]]

    flops = 2 * Bp * (KP * 512 + 512 * 256 + 256 * 128 + 128 * 1)
    bytes_accessed = (sum(int(a.size) * a.dtype.itemsize for a in flat) + Bp * 4)
    cost = pl.CostEstimate(flops=flops, transcendentals=0,
                           bytes_accessed=bytes_accessed)

    out_t = pl.pallas_call(
        _disc_kernel,
        out_shape=jax.ShapeDtypeStruct((1, Bp), jnp.float32),
        grid=grid,
        in_specs=in_specs,
        out_specs=pl.BlockSpec((1, TB), lambda i: (0, i)),
        compiler_params=pltpu.CompilerParams(
            dimension_semantics=("parallel",),       # megacore split over batch tiles
            vmem_limit_bytes=48 * 1024 * 1024,       # covers TB<=2048 on all generations
        ),
        cost_estimate=cost,
    )(*flat)

    # Back to the module's (B, 1) convention; drop batch padding.
    return out_t[0, :B].reshape(B, 1)


def reference_forward(x, params):
    """Pure-JAX f32 reference matching the PyTorch module: x @ W.T + b, ReLU between."""
    h = x
    for i, (w, b) in enumerate(params):
        h = h @ w.T + b
        if i < len(params) - 1:
            h = jnp.maximum(h, 0.0)
    return h


if __name__ == "__main__":
    key = jax.random.PRNGKey(0)
    k_x1, k_x2, k_p = jax.random.split(key, 3)

    input_dim = 3
    params = init_params(k_p, input_dim=input_dim)
    prepped = prepare_disc_params(params)

    fwd = jax.jit(discriminator_forward, static_argnames=("tb",))

    # Small-batch check (single grid step).
    x1 = jax.random.normal(k_x1, (8, input_dim), jnp.float32)
    out1 = jax.block_until_ready(fwd(x1, prepped))
    ref1 = reference_forward(x1, params)
    assert out1.shape == (8, 1)
    assert jnp.allclose(out1, ref1, atol=5e-2, rtol=5e-2), "mismatch (B=8)"

    # Multi-tile check (>= 2 grid steps -> exercises pipeline / megacore split).
    x2 = jax.random.normal(k_x2, (384, input_dim), jnp.float32)
    out2 = jax.block_until_ready(fwd(x2, prepped))
    ref2 = reference_forward(x2, params)
    assert out2.shape == (384, 1)
    assert jnp.allclose(out2, ref2, atol=5e-2, rtol=5e-2), "mismatch (B=384)"

    print("KERNEL_OK")
</pallas_src>

<mosaic_0001>
module attributes {stable_mosaic.version = 11 : i64} {
  func.func @_disc_kernel(%arg0: i32, %arg1: memref<16x128xf32, #tpu.memory_space<vmem>>, %arg2: memref<512x16xbf16, #tpu.memory_space<vmem>>, %arg3: memref<256x512xbf16, #tpu.memory_space<vmem>>, %arg4: memref<256x1xf32, #tpu.memory_space<vmem>>, %arg5: memref<128x256xbf16, #tpu.memory_space<vmem>>, %arg6: memref<128x1xf32, #tpu.memory_space<vmem>>, %arg7: memref<1x128xbf16, #tpu.memory_space<vmem>>, %arg8: memref<1x1xf32, #tpu.memory_space<vmem>>, %arg9: memref<1x128xf32, #tpu.memory_space<vmem>>) attributes {dimension_semantics = [#tpu.dimension_semantics<parallel>], iteration_bounds = array<i64: 1>, scalar_prefetch = 0 : i64, scratch_operands = 0 : i64, tpu.core_type = #tpu.core_type<tc>, window_params = [{transform_indices = @transform_0, window_bounds = array<i64: 16, 128>}, {pipeline_mode = #tpu.pipeline_mode<synchronous>, transform_indices = @transform_1, window_bounds = array<i64: 512, 16>}, {pipeline_mode = #tpu.pipeline_mode<synchronous>, transform_indices = @transform_2, window_bounds = array<i64: 256, 512>}, {pipeline_mode = #tpu.pipeline_mode<synchronous>, transform_indices = @transform_3, window_bounds = array<i64: 256, 1>}, {pipeline_mode = #tpu.pipeline_mode<synchronous>, transform_indices = @transform_4, window_bounds = array<i64: 128, 256>}, {pipeline_mode = #tpu.pipeline_mode<synchronous>, transform_indices = @transform_5, window_bounds = array<i64: 128, 1>}, {pipeline_mode = #tpu.pipeline_mode<synchronous>, transform_indices = @transform_6, window_bounds = array<i64: 1, 128>}, {pipeline_mode = #tpu.pipeline_mode<synchronous>, transform_indices = @transform_7, window_bounds = array<i64: 1, 1>}, {transform_indices = @transform_8, window_bounds = array<i64: 1, 128>}]} {
    %c0 = arith.constant 0 : index
    %c0_0 = arith.constant 0 : index
    %0 = vector.load %arg1[%c0, %c0_0] : memref<16x128xf32, #tpu.memory_space<vmem>>, vector<16x128xf32>
    %1 = arith.truncf %0 : vector<16x128xf32> to vector<16x128xbf16>
    %c0_1 = arith.constant 0 : index
    %c0_2 = arith.constant 0 : index
    %2 = vector.load %arg2[%c0_1, %c0_2] : memref<512x16xbf16, #tpu.memory_space<vmem>>, vector<512x16xbf16>
    %cst = arith.constant dense<0.000000e+00> : vector<512x128xf32>
    %3 = tpu.matmul %2, %1, %cst {dimension_numbers = #tpu.dot_dimension_numbers<[1], [0], [0], [1], [0, 0, 1, 1], [], []>} : vector<512x16xbf16>, vector<16x128xbf16>, vector<512x128xf32> -> vector<512x128xf32>
    %cst_3 = arith.constant 0.000000e+00 : f32
    %4 = vector.broadcast %cst_3 : f32 to vector<512x128xf32>
    %5 = arith.maximumf %3, %4 : vector<512x128xf32>
    %6 = arith.truncf %5 : vector<512x128xf32> to vector<512x128xbf16>
    %c0_4 = arith.constant 0 : index
    %c0_5 = arith.constant 0 : index
    %7 = vector.load %arg3[%c0_4, %c0_5] : memref<256x512xbf16, #tpu.memory_space<vmem>>, vector<256x512xbf16>
    %cst_6 = arith.constant dense<0.000000e+00> : vector<256x128xf32>
    %8 = tpu.matmul %7, %6, %cst_6 {dimension_numbers = #tpu.dot_dimension_numbers<[1], [0], [0], [1], [0, 0, 1, 1], [], []>} : vector<256x512xbf16>, vector<512x128xbf16>, vector<256x128xf32> -> vector<256x128xf32>
    %c0_7 = arith.constant 0 : index
    %c0_8 = arith.constant 0 : index
    %9 = vector.load %arg4[%c0_7, %c0_8] : memref<256x1xf32, #tpu.memory_space<vmem>>, vector<256x1xf32>
    %10 = vector.broadcast %9 : vector<256x1xf32> to vector<256x128xf32>
    %11 = arith.addf %8, %10 : vector<256x128xf32>
    %cst_9 = arith.constant 0.000000e+00 : f32
    %12 = vector.broadcast %cst_9 : f32 to vector<256x128xf32>
    %13 = arith.maximumf %11, %12 : vector<256x128xf32>
    %14 = arith.truncf %13 : vector<256x128xf32> to vector<256x128xbf16>
    %c0_10 = arith.constant 0 : index
    %c0_11 = arith.constant 0 : index
    %15 = vector.load %arg5[%c0_10, %c0_11] : memref<128x256xbf16, #tpu.memory_space<vmem>>, vector<128x256xbf16>
    %cst_12 = arith.constant dense<0.000000e+00> : vector<128x128xf32>
    %16 = tpu.matmul %15, %14, %cst_12 {dimension_numbers = #tpu.dot_dimension_numbers<[1], [0], [0], [1], [0, 0, 1, 1], [], []>} : vector<128x256xbf16>, vector<256x128xbf16>, vector<128x128xf32> -> vector<128x128xf32>
    %c0_13 = arith.constant 0 : index
    %c0_14 = arith.constant 0 : index
    %17 = vector.load %arg6[%c0_13, %c0_14] : memref<128x1xf32, #tpu.memory_space<vmem>>, vector<128x1xf32>
    %18 = vector.broadcast %17 : vector<128x1xf32> to vector<128x128xf32>
    %19 = arith.addf %16, %18 : vector<128x128xf32>
    %cst_15 = arith.constant 0.000000e+00 : f32
    %20 = vector.broadcast %cst_15 : f32 to vector<128x128xf32>
    %21 = arith.maximumf %19, %20 : vector<128x128xf32>
    %22 = arith.truncf %21 : vector<128x128xf32> to vector<128x128xbf16>
    %c0_16 = arith.constant 0 : index
    %c0_17 = arith.constant 0 : index
    %23 = vector.load %arg7[%c0_16, %c0_17] : memref<1x128xbf16, #tpu.memory_space<vmem>>, vector<1x128xbf16>
    %cst_18 = arith.constant dense<0.000000e+00> : vector<1x128xf32>
    %24 = tpu.matmul %23, %22, %cst_18 {dimension_numbers = #tpu.dot_dimension_numbers<[1], [0], [0], [1], [0, 0, 1, 1], [], []>} : vector<1x128xbf16>, vector<128x128xbf16>, vector<1x128xf32> -> vector<1x128xf32>
    %c0_19 = arith.constant 0 : index
    %c0_20 = arith.constant 0 : index
    %25 = vector.load %arg8[%c0_19, %c0_20] : memref<1x1xf32, #tpu.memory_space<vmem>>, vector<1x1xf32>
    %26 = vector.broadcast %25 : vector<1x1xf32> to vector<1x128xf32>
    %27 = arith.addf %24, %26 : vector<1x128xf32>
    %c0_21 = arith.constant 0 : index
    %c0_22 = arith.constant 0 : index
    %28 = vector.load %arg9[%c0_21, %c0_22] : memref<1x128xf32, #tpu.memory_space<vmem>>, vector<1x128xf32>
    tpu.vector_store %arg9[%c0_21, %c0_22], %27 {strides = array<i32>} : memref<1x128xf32, #tpu.memory_space<vmem>>, vector<1x128xf32>,
    return
  }
  func.func @transform_0(%arg0: i32) -> (i32, i32) {
    %c0_i32 = arith.constant 0 : i32
    %c0_i32_0 = arith.constant 0 : i32
    return %c0_i32, %arg0 : i32, i32
  }
  func.func @transform_1(%arg0: i32) -> (i32, i32) {
    %c0_i32 = arith.constant 0 : i32
    %c0_i32_0 = arith.constant 0 : i32
    %c0_i32_1 = arith.constant 0 : i32
    return %c0_i32, %c0_i32_0 : i32, i32
  }
  func.func @transform_2(%arg0: i32) -> (i32, i32) {
    %c0_i32 = arith.constant 0 : i32
    %c0_i32_0 = arith.constant 0 : i32
    %c0_i32_1 = arith.constant 0 : i32
    return %c0_i32, %c0_i32_0 : i32, i32
  }
  func.func @transform_3(%arg0: i32) -> (i32, i32) {
    %c0_i32 = arith.constant 0 : i32
    %c0_i32_0 = arith.constant 0 : i32
    %c0_i32_1 = arith.constant 0 : i32
    return %c0_i32, %c0_i32_0 : i32, i32
  }
  func.func @transform_4(%arg0: i32) -> (i32, i32) {
    %c0_i32 = arith.constant 0 : i32
    %c0_i32_0 = arith.constant 0 : i32
    %c0_i32_1 = arith.constant 0 : i32
    return %c0_i32, %c0_i32_0 : i32, i32
  }
  func.func @transform_5(%arg0: i32) -> (i32, i32) {
    %c0_i32 = arith.constant 0 : i32
    %c0_i32_0 = arith.constant 0 : i32
    %c0_i32_1 = arith.constant 0 : i32
    return %c0_i32, %c0_i32_0 : i32, i32
  }
  func.func @transform_6(%arg0: i32) -> (i32, i32) {
    %c0_i32 = arith.constant 0 : i32
    %c0_i32_0 = arith.constant 0 : i32
    %c0_i32_1 = arith.constant 0 : i32
    return %c0_i32, %c0_i32_0 : i32, i32
  }
  func.func @transform_7(%arg0: i32) -> (i32, i32) {
    %c0_i32 = arith.constant 0 : i32
    %c0_i32_0 = arith.constant 0 : i32
    %c0_i32_1 = arith.constant 0 : i32
    return %c0_i32, %c0_i32_0 : i32, i32
  }
  func.func @transform_8(%arg0: i32) -> (i32, i32) {
    %c0_i32 = arith.constant 0 : i32
    %c0_i32_0 = arith.constant 0 : i32
    return %c0_i32, %arg0 : i32, i32
  }
}

</mosaic_0001>

<bundles_post_ra>
// kernel: discriminator_forward.1
= control target key start
LH: loop header
LB: loop body
LE: loop exit
PB: predicated region body
PF: predicated region fallthrough
CT: control target
= control target key end

     0   :  { %vm259_vm0 = vcmask 130048   ;;  %vm2775_vm1 = vmmov 0   ;;  %s3579_s0 = inlined_call_operand.vmem [shape: f32[16,128], index: 0, kind: input, shape index: {}]   ;;  %s3580_s1 = inlined_call_operand.vmem [shape: bf16[512,16], index: 1, kind: input, shape index: {}]   ;;  %s3581_s2 = inlined_call_operand.vmem [shape: bf16[256,512], index: 2, kind: input, shape index: {}]   ;;  %s3582_s3 = inlined_call_operand.vmem [shape: f32[256,1], index: 3, kind: input, shape index: {}]   ;;  %s3583_s5 = inlined_call_operand.vmem [shape: f32[128,1], index: 5, kind: input, shape index: {}]   ;;  %s3584_s7 = inlined_call_operand.<no memory space> [shape: f32[1,1], index: 7, kind: input, shape index: {}]   ;;  %s3585_s4 = inlined_call_operand.vmem [shape: bf16[128,256], index: 4, kind: input, shape index: {}]   ;;  %s3586_s6 = inlined_call_operand.vmem [shape: bf16[1,128], index: 6, kind: input, shape index: {}]   ;;  %s3587_s8 = inlined_call_operand.vmem [shape: f32[1,128], index: 8, kind: output, shape index: {}]  }
   0x1   :  { %v32_v0 = vld [vmem:[%s3579_s0] sm:$0xff]  ;;  %v33_v1 = vld [vmem:[%s3579_s0 + $0x8] sm:$0xff]  ;;  %v2623_v5 = vld [vmem:[%s3580_s1 + $0x10] sm:$0xff]  }
   0x2   :  { %v34_v2 = vpack.c.bf16 %v33_v1, %v32_v0  ;;  %v2621_v3 = vld [vmem:[%s3580_s1] sm:$0xff]   ;;  %v2622_v4 = vld [vmem:[%s3580_s1 + $0x8] sm:$0xff]   ;;  %v2624_v6 = vld [vmem:[%s3580_s1 + $0x18] sm:$0xff]  }
   0x3   :  { %2532 = vmatprep.mubr.msk.bf16.mxu0 %vm259_vm0, %v2621_v3  ;;  %v2625_v7 = vld [vmem:[%s3580_s1 + $0x20] sm:$0xff]   ;;  %v2626_v8 = vld [vmem:[%s3580_s1 + $0x28] sm:$0xff]   ;;  %v2627_v9 = vld [vmem:[%s3580_s1 + $0x30] sm:$0xff]  }
   0x4   :  { %2530 = vmatprep.subr.bf16.mxu0 %v34_v2  ;;  %v2628_v10 = vld [vmem:[%s3580_s1 + $0x38] sm:$0xff]   ;;  %v2629_v11 = vld [vmem:[%s3580_s1 + $0x40] sm:$0xff]   ;;  %v2630_v12 = vld [vmem:[%s3580_s1 + $0x48] sm:$0xff]  }
   0x5   :  { %2531 = vmatpush3.bf16.msra.mxu0 %v34_v2  ;;  %v2631_v13 = vld [vmem:[%s3580_s1 + $0x50] sm:$0xff]   ;;  %v2632_v14 = vld [vmem:[%s3580_s1 + $0x58] sm:$0xff]   ;;  %v2633_v15 = vld [vmem:[%s3580_s1 + $0x60] sm:$0xff]  }
   0x6   :  { %v2634_v16 = vld [vmem:[%s3580_s1 + $0x68] sm:$0xff]   ;;  %v2635_v17 = vld [vmem:[%s3580_s1 + $0x70] sm:$0xff]   ;;  %v2636_v18 = vld [vmem:[%s3580_s1 + $0x78] sm:$0xff]  }
   0x7   :  { %v2637_v19 = vld [vmem:[%s3580_s1 + $0x80] sm:$0xff]   ;;  %v2638_v20 = vld [vmem:[%s3580_s1 + $0x88] sm:$0xff]   ;;  %v2639_v21 = vld [vmem:[%s3580_s1 + $0x90] sm:$0xff]  }
   0x8   :  { %2533 = vmatmul.mubr.msk.bf16.vlgmr.msra.gmra.mrb[0].mxu0 %vm259_vm0, %v2622_v4  ;;  %v2640_v22 = vld [vmem:[%s3580_s1 + $0x98] sm:$0xff]   ;;  %v2641_v23 = vld [vmem:[%s3580_s1 + $0xa0] sm:$0xff]   ;;  %v2642_v24 = vld [vmem:[%s3580_s1 + $0xa8] sm:$0xff]  }
   0x9   :  { %2536 = vmatprep.mubr.msk.bf16.mxu0 %vm259_vm0, %v2623_v5  ;;  %v2643_v25 = vld [vmem:[%s3580_s1 + $0xb0] sm:$0xff]   ;;  %v2644_v26 = vld [vmem:[%s3580_s1 + $0xb8] sm:$0xff]   ;;  %v2645_v27 = vld [vmem:[%s3580_s1 + $0xc0] sm:$0xff]  }
   0xa   :  { %v2646_v28 = vld [vmem:[%s3580_s1 + $0xc8] sm:$0xff]   ;;  %v2647_v29 = vld [vmem:[%s3580_s1 + $0xd0] sm:$0xff]   ;;  %v2648_v30 = vld [vmem:[%s3580_s1 + $0xd8] sm:$0xff]  }
   0xb   :  { %v2649_v31 = vld [vmem:[%s3580_s1 + $0xe0] sm:$0xff]   ;;  %v2650_v32 = vld [vmem:[%s3580_s1 + $0xe8] sm:$0xff]   ;;  %v2651_v33 = vld [vmem:[%s3580_s1 + $0xf0] sm:$0xff]  }
   0xc   :  { %v2652_v34 = vld [vmem:[%s3580_s1 + $0xf8] sm:$0xff]   ;;  %v2655_v35 = vld [vmem:[%s3581_s2 + $0x4] ss:$16 sps:$4 sm:$0xff]  }
   0xd   :  { %1349 = vmatprep.mubr.bf16.mxu1 %v2655_v35  ;;  %v2670_v45 = vld [vmem:[%s3581_s2 + $0xc] ss:$16 sps:$4 sm:$0xff]  }
  0x10   :  { %2537 = vmatmul.mubr.msk.bf16.gmra.mrb[4].mxu0 %vm259_vm0, %v2624_v6 }
  0x11   :  { %2540 = vmatprep.mubr.msk.bf16.mxu0 %vm259_vm0, %v2625_v7 }
  0x18   :  { %2541 = vmatmul.mubr.msk.bf16.gmra.mrb[8].mxu0 %vm259_vm0, %v2626_v8 }
  0x19   :  { %2544 = vmatprep.mubr.msk.bf16.mxu0 %vm259_vm0, %v2627_v9 }
  0x20   :  { %2545 = vmatmul.mubr.msk.bf16.gmra.mrb[12].mxu0 %vm259_vm0, %v2628_v10 }
  0x21   :  { %2548 = vmatprep.mubr.msk.bf16.mxu0 %vm259_vm0, %v2629_v11 }
  0x28   :  { %2549 = vmatmul.mubr.msk.bf16.gmra.mrb[16].mxu0 %vm259_vm0, %v2630_v12 }
  0x29   :  { %2552 = vmatprep.mubr.msk.bf16.mxu0 %vm259_vm0, %v2631_v13 }
  0x30   :  { %2553 = vmatmul.mubr.msk.bf16.gmra.mrb[20].mxu0 %vm259_vm0, %v2632_v14 }
  0x31   :  { %2556 = vmatprep.mubr.msk.bf16.mxu0 %vm259_vm0, %v2633_v15 }
  0x38   :  { %2557 = vmatmul.mubr.msk.bf16.gmra.mrb[24].mxu0 %vm259_vm0, %v2634_v16 }
  0x39   :  { %2560 = vmatprep.mubr.msk.bf16.mxu0 %vm259_vm0, %v2635_v17 }
  0x40   :  { %2561 = vmatmul.mubr.msk.bf16.gmra.mrb[28].mxu0 %vm259_vm0, %v2636_v18 }
  0x41   :  { %2564 = vmatprep.mubr.msk.bf16.mxu0 %vm259_vm0, %v2637_v19 }
  0x48   :  { %2565 = vmatmul.mubr.msk.bf16.gmra.mrb[32].mxu0 %vm259_vm0, %v2638_v20 }
  0x49   :  { %2568 = vmatprep.mubr.msk.bf16.mxu0 %vm259_vm0, %v2639_v21 }
  0x50   :  { %2569 = vmatmul.mubr.msk.bf16.gmra.mrb[36].mxu0 %vm259_vm0, %v2640_v22 }
  0x51   :  { %2572 = vmatprep.mubr.msk.bf16.mxu0 %vm259_vm0, %v2641_v23 }
  0x58   :  { %2573 = vmatmul.mubr.msk.bf16.gmra.mrb[40].mxu0 %vm259_vm0, %v2642_v24 }
  0x59   :  { %2576 = vmatprep.mubr.msk.bf16.mxu0 %vm259_vm0, %v2643_v25 }
  0x60   :  { %2577 = vmatmul.mubr.msk.bf16.gmra.mrb[44].mxu0 %vm259_vm0, %v2644_v26 }
  0x61   :  { %2580 = vmatprep.mubr.msk.bf16.mxu0 %vm259_vm0, %v2645_v27 }
  0x68   :  { %2581 = vmatmul.mubr.msk.bf16.gmra.mrb[48].mxu0 %vm259_vm0, %v2646_v28 }
  0x69   :  { %2584 = vmatprep.mubr.msk.bf16.mxu0 %vm259_vm0, %v2647_v29 }
  0x70   :  { %2585 = vmatmul.mubr.msk.bf16.gmra.mrb[52].mxu0 %vm259_vm0, %v2648_v30 }
  0x71   :  { %2588 = vmatprep.mubr.msk.bf16.mxu0 %vm259_vm0, %v2649_v31 }
  0x78   :  { %2589 = vmatmul.mubr.msk.bf16.gmra.mrb[56].mxu0 %vm259_vm0, %v2650_v32 }
  0x79   :  { %2592 = vmatprep.mubr.msk.bf16.mxu0 %vm259_vm0, %v2651_v33 }
  0x80   :  { %2593 = vmatmul.mubr.msk.bf16.gmra.mrb[60].mxu0 %vm259_vm0, %v2652_v34 }
  0x81   :  { %1510 = vmatprep.mubr.bf16.mxu0 %v2670_v45 }
  0xdb   :  { %v2534_v36 = vpop.f32.mrb[0].mxu0 }
  0xdc   :  { %v390_v37 = vpop.f32.mrb[1].mxu0  ;;  %v647_v39 = vmax.f32 %v2534_v36, 0.0 }
  0xdd   :  { %v2535_v38 = vpop.f32.mrb[2].mxu0  ;;  %v645_v42 = vmax.f32 %v390_v37, 0.0 }
  0xde   :  { %v648_v40 = vmax.f32 %v2535_v38, 0.0  ;;  %v393_v41 = vpop.f32.mrb[3].mxu0 }
  0xdf   :  { %v646_v43 = vmax.f32 %v393_v41, 0.0 }
  0xe0   :  { %v710_v44 = vpack.c.bf16 %v648_v40, %v647_v39 }
  0xe1   :  { %v709_v46 = vpack.c.bf16 %v646_v43, %v645_v42 }
  0xe3   :  { %v2538_v47 = vpop.f32.mrb[4].mxu0 }
  0xe4   :  { %v406_v48 = vpop.f32.mrb[5].mxu0  ;;  %v651_v50 = vmax.f32 %v2538_v47, 0.0 }
  0xe5   :  { %v2539_v49 = vpop.f32.mrb[6].mxu0  ;;  %v649_v53 = vmax.f32 %v406_v48, 0.0 }
  0xe6   :  { %v652_v51 = vmax.f32 %v2539_v49, 0.0  ;;  %v409_v52 = vpop.f32.mrb[7].mxu0  ;;  %v2773_v49 = vmov 0  }
  0xe7   :  { %v650_v54 = vmax.f32 %v409_v52, 0.0  ;;  %2619 = vset.pattern.permute.xlu0 %v2773_v49  ;;  %2620 = vset.pattern.permute.xlu1 %v2773_v49 }
  0xe8   :  { %v712_v55 = vpack.c.bf16 %v652_v51, %v651_v50  ;;  %v821_v50 = vld [vmem:[%s3582_s3 + $0x80] sm:$0xff] }
  0xe9   :  { %v711_v56 = vpack.c.bf16 %v650_v54, %v649_v53  ;;  %919 = vperm.xlu0 %2619, %v821_v50  }
  0xeb   :  { %v2542_v57 = vpop.f32.mrb[8].mxu0 }
  0xec   :  { %v422_v58 = vpop.f32.mrb[9].mxu0  ;;  %v655_v60 = vmax.f32 %v2542_v57, 0.0 }
  0xed   :  { %v2543_v59 = vpop.f32.mrb[10].mxu0  ;;  %v653_v63 = vmax.f32 %v422_v58, 0.0 }
  0xee   :  { %v656_v61 = vmax.f32 %v2543_v59, 0.0  ;;  %v425_v62 = vpop.f32.mrb[11].mxu0 }
  0xef   :  { %v654_v0 = vmax.f32 %v425_v62, 0.0 }
  0xf0   :  { %v2961_v1 = vpack.c.bf16 %v656_v61, %v655_v60 }
  0xf1   :  { %v713_v2 = vpack.c.bf16 %v654_v0, %v653_v63  ;;  %v823_v63 = vld [vmem:[%s3582_s3 + $0x90] sm:$0xff]  ;;  %v806_v0 = vld [vmem:[%s3582_s3 + $0x8] sm:$0xff] }
  0xf3   :  { %v2546_v3 = vpop.f32.mrb[12].mxu0 }
  0xf4   :  { %v438_v4 = vpop.f32.mrb[13].mxu0  ;;  %v659_v6 = vmax.f32 %v2546_v3, 0.0  ;;  %v2653_v3 = vld [vmem:[%s3581_s2] ss:$16 sps:$4 sm:$0xff]  }
  0xf5   :  { %v2547_v5 = vpop.f32.mrb[14].mxu0  ;;  %v657_v9 = vmax.f32 %v438_v4, 0.0 }
  0xf6   :  { %v660_v7 = vmax.f32 %v2547_v5, 0.0  ;;  %v441_v8 = vpop.f32.mrb[15].mxu0  ;;  %v2656_v5 = vld [vmem:[%s3581_s2 + $0x24] ss:$16 sps:$4 sm:$0xff]  }
  0xf7   :  { %v658_v10 = vmax.f32 %v441_v8, 0.0  ;;  %v824_v8 = vld [vmem:[%s3582_s3 + $0x98] sm:$0xff] }
  0xf8   :  { %v2963_v11 = vpack.c.bf16 %v660_v7, %v659_v6  ;;  %v807_v7 = vld [vmem:[%s3582_s3 + $0x10] sm:$0xff] }
  0xf9   :  { %v2965_v12 = vpack.c.bf16 %v658_v10, %v657_v9 }
  0xfb   :  { %v2550_v13 = vpop.f32.mrb[16].mxu0 }
  0xfc   :  { %v454_v14 = vpop.f32.mrb[17].mxu0  ;;  %v663_v16 = vmax.f32 %v2550_v13, 0.0 }
  0xfd   :  { %v2551_v15 = vpop.f32.mrb[18].mxu0  ;;  %v661_v19 = vmax.f32 %v454_v14, 0.0 }
  0xfe   :  { %v664_v17 = vmax.f32 %v2551_v15, 0.0  ;;  %v457_v18 = vpop.f32.mrb[19].mxu0  ;;  %v825_v15 = vld [vmem:[%s3582_s3 + $0xa0] sm:$0xff] }
  0xff   :  { %v662_v20 = vmax.f32 %v457_v18, 0.0 }
 0x100   :  { %v718_v21 = vpack.c.bf16 %v664_v17, %v663_v16  ;;  %v808_v16 = vld [vmem:[%s3582_s3 + $0x18] sm:$0xff] }
 0x101   :  { %v717_v22 = vpack.c.bf16 %v662_v20, %v661_v19  ;;  %v2658_v19 = vld [vmem:[%s3581_s2 + $0x20] ss:$16 sps:$4 sm:$0xff]  }
 0x103   :  { %v2554_v23 = vpop.f32.mrb[20].mxu0  ;;  %2233 = vmatprep.subr.bf16.mxu1 %v717_v22 }
 0x104   :  { %v470_v24 = vpop.f32.mrb[21].mxu0  ;;  %2234 = vmatpush3.bf16.msra.mxu1 %v709_v46  ;;  %v667_v26 = vmax.f32 %v2554_v23, 0.0  ;;  %v809_v23 = vld [vmem:[%s3582_s3 + $0x20] sm:$0xff] }
 0x105   :  { %v2555_v25 = vpop.f32.mrb[22].mxu0  ;;  %2235 = vmatprep.subr.bf16.mxu1 %v718_v21  ;;  %v665_v29 = vmax.f32 %v470_v24, 0.0  ;;  %v2659_v21 = vld [vmem:[%s3581_s2 + $0x44] ss:$16 sps:$4 sm:$0xff]   ;;  %v826_v24 = vld [vmem:[%s3582_s3 + $0xa8] sm:$0xff] }
 0x106   :  { %v668_v27 = vmax.f32 %v2555_v25, 0.0  ;;  %v473_v28 = vpop.f32.mrb[23].mxu0 }
 0x107   :  { %v666_v30 = vmax.f32 %v473_v28, 0.0 }
 0x108   :  { %v720_v31 = vpack.c.bf16 %v668_v27, %v667_v26  ;;  %2236 = vmatpush3.bf16.msra.mxu1 %v710_v44 }
 0x109   :  { %v719_v32 = vpack.c.bf16 %v666_v30, %v665_v29 }
 0x10b   :  { %v2558_v33 = vpop.f32.mrb[24].mxu0  ;;  %2237 = vmatprep.subr.bf16.mxu1 %v719_v32  ;;  %v810_v32 = vld [vmem:[%s3582_s3 + $0x28] sm:$0xff] }
 0x10c   :  { %v486_v34 = vpop.f32.mrb[25].mxu0  ;;  %2238 = vmatpush3.bf16.msra.mxu1 %v711_v56  ;;  %v671_v36 = vmax.f32 %v2558_v33, 0.0  ;;  %v805_v56 = vld [vmem:[%s3582_s3] sm:$0xff] }
 0x10d   :  { %v2559_v35 = vpop.f32.mrb[26].mxu0  ;;  %2239 = vmatprep.subr.bf16.mxu1 %v720_v31  ;;  %v669_v39 = vmax.f32 %v486_v34, 0.0  ;;  %839 = vperm.xlu1 %2620, %v805_v56   ;;  %v827_v31 = vld [vmem:[%s3582_s3 + $0xb0] sm:$0xff]  ;;  %v830_v56 = vld [vmem:[%s3582_s3 + $0xc8] sm:$0xff] }
 0x10e   :  { %v672_v37 = vmax.f32 %v2559_v35, 0.0  ;;  %v489_v38 = vpop.f32.mrb[27].mxu0  ;;  %v2661_v35 = vld [vmem:[%s3581_s2 + $0x40] ss:$16 sps:$4 sm:$0xff]  }
 0x10f   :  { %v670_v40 = vmax.f32 %v489_v38, 0.0 }
 0x110   :  { %v722_v41 = vpack.c.bf16 %v672_v37, %v671_v36  ;;  %2240 = vmatpush3.bf16.msra.mxu1 %v712_v55  ;;  %v822_v55 = vld [vmem:[%s3582_s3 + $0x88] sm:$0xff]  ;;  %v2662_v37 = vld [vmem:[%s3581_s2 + $0x64] ss:$16 sps:$4 sm:$0xff]  }
 0x111   :  { %v721_v42 = vpack.c.bf16 %v670_v40, %v669_v39  ;;  %924 = vperm.xlu0 %2619, %v822_v55   ;;  %844 = vperm.xlu1 %2620, %v806_v0   ;;  %v811_v39 = vld [vmem:[%s3582_s3 + $0x30] sm:$0xff]  ;;  %v828_v40 = vld [vmem:[%s3582_s3 + $0xb8] sm:$0xff]  ;;  %v813_v55 = vld [vmem:[%s3582_s3 + $0x40] sm:$0xff] }
 0x112   :  { %v814_v0 = vld [vmem:[%s3582_s3 + $0x48] sm:$0xff] }
 0x113   :  { %v2562_v43 = vpop.f32.mrb[28].mxu0  ;;  %2241 = vmatprep.subr.bf16.mxu1 %v721_v42 }
 0x114   :  { %v502_v45 = vpop.f32.mrb[29].mxu0  ;;  %2242 = vmatpush3.bf16.msra.mxu1 %v713_v2  ;;  %v675_v46 = vmax.f32 %v2562_v43, 0.0 }
 0x115   :  { %v2563_v44 = vpop.f32.mrb[30].mxu0  ;;  %2243 = vmatprep.subr.bf16.mxu1 %v722_v41  ;;  %v673_v51 = vmax.f32 %v502_v45, 0.0  ;;  %929 = vperm.xlu0 %2619, %v823_v63   ;;  %v831_v63 = vld [vmem:[%s3582_s3 + $0xd0] sm:$0xff] }
 0x116   :  { %v676_v47 = vmax.f32 %v2563_v44, 0.0  ;;  %v505_v48 = vpop.f32.mrb[31].mxu0  ;;  %934 = vperm.xlu1 %2620, %v824_v8  }
 0x117   :  { %v674_v52 = vmax.f32 %v505_v48, 0.0  ;;  %v812_v48 = vld [vmem:[%s3582_s3 + $0x38] sm:$0xff] }
 0x118   :  { %v724_v53 = vpack.c.bf16 %v676_v47, %v675_v46  ;;  %2244 = vmatpush3.bf16.msra.mxu1 %v2961_v1  ;;  %v829_v47 = vld [vmem:[%s3582_s3 + $0xc0] sm:$0xff] }
 0x119   :  { %v723_v54 = vpack.c.bf16 %v674_v52, %v673_v51  ;;  %849 = vperm.xlu0 %2619, %v807_v7   ;;  %v2664_v51 = vld [vmem:[%s3581_s2 + $0x60] ss:$16 sps:$4 sm:$0xff]   ;;  %v2671_v7 = vld [vmem:[%s3581_s2 + $0xa4] ss:$16 sps:$4 sm:$0xff]  }
 0x11a   :  { %854 = vperm.xlu1 %2620, %v808_v16  }
 0x11b   :  { %v2566_v57 = vpop.f32.mrb[32].mxu0  ;;  %2245 = vmatprep.subr.bf16.mxu1 %v723_v54 }
 0x11c   :  { %v518_v58 = vpop.f32.mrb[33].mxu0  ;;  %2246 = vmatpush3.bf16.msra.mxu1 %v2965_v12  ;;  %v679_v60 = vmax.f32 %v2566_v57, 0.0 }
 0x11d   :  { %v2567_v59 = vpop.f32.mrb[34].mxu0  ;;  %2247 = vmatprep.subr.bf16.mxu1 %v724_v53  ;;  %v677_v1 = vmax.f32 %v518_v58, 0.0  ;;  %939 = vperm.xlu0 %2619, %v825_v15   ;;  %v2665_v53 = vld [vmem:[%s3581_s2 + $0x84] ss:$16 sps:$4 sm:$0xff]  }
 0x11e   :  { %v680_v61 = vmax.f32 %v2567_v59, 0.0  ;;  %v521_v62 = vpop.f32.mrb[35].mxu0  ;;  %944 = vperm.xlu1 %2620, %v826_v24   ;;  %v2677_v24 = vld [vmem:[%s3581_s2 + $0xc4] ss:$16 sps:$4 sm:$0xff]  }
 0x11f   :  { %v678_v2 = vmax.f32 %v521_v62, 0.0 }
 0x120   :  { %v2987_v4 = vpack.c.bf16 %v680_v61, %v679_v60  ;;  %2248 = vmatpush3.bf16.msra.mxu1 %v2963_v11 }
 0x121   :  { %v2993_v6 = vpack.c.bf16 %v678_v2, %v677_v1  ;;  %859 = vperm.xlu0 %2619, %v809_v23  }
 0x122   :  { %864 = vperm.xlu1 %2620, %v810_v32  }
 0x123   :  { %v2570_v9 = vpop.f32.mrb[36].mxu0  ;;  %1350 = vmatmul.mubr.bf16.vlgmr.msra.gmra.mrb[0].mxu1 %v2653_v3  ;;  %v2667_v3 = vld [vmem:[%s3581_s2 + $0x80] ss:$16 sps:$4 sm:$0xff]  }
 0x124   :  { %v534_v10 = vpop.f32.mrb[37].mxu0  ;;  %1357 = vmatprep.mubr.bf16.mxu1 %v2656_v5  ;;  %v683_v12 = vmax.f32 %v2570_v9, 0.0  ;;  %v815_v9 = vld [vmem:[%s3582_s3 + $0x50] sm:$0xff] }
 0x125   :  { %v2571_v11 = vpop.f32.mrb[38].mxu0  ;;  %v681_v17 = vmax.f32 %v534_v10, 0.0  ;;  %949 = vperm.xlu0 %2619, %v827_v31  }
 0x126   :  { %v684_v13 = vmax.f32 %v2571_v11, 0.0  ;;  %v537_v14 = vpop.f32.mrb[39].mxu0  ;;  %954 = vperm.xlu1 %2620, %v828_v40   ;;  %v832_v11 = vld [vmem:[%s3582_s3 + $0xd8] sm:$0xff]  ;;  %v2683_v40 = vld [vmem:[%s3581_s2 + $0xe4] ss:$16 sps:$4 sm:$0xff]  }
 0x127   :  { %v682_v18 = vmax.f32 %v537_v14, 0.0 }
 0x128   :  { %v3010_v20 = vpack.c.bf16 %v684_v13, %v683_v12 }
 0x129   :  { %v3015_v22 = vpack.c.bf16 %v682_v18, %v681_v17  ;;  %869 = vperm.xlu0 %2619, %v811_v39   ;;  %v833_v17 = vld [vmem:[%s3582_s3 + $0xe0] sm:$0xff] }
 0x12a   :  { %874 = vperm.xlu1 %2620, %v812_v48  }
 0x12b   :  { %v2574_v25 = vpop.f32.mrb[40].mxu0  ;;  %1358 = vmatmul.mubr.bf16.gmra.mrb[4].mxu1 %v2658_v19 }
 0x12c   :  { %v550_v26 = vpop.f32.mrb[41].mxu0  ;;  %1365 = vmatprep.mubr.bf16.mxu1 %v2659_v21  ;;  %v687_v28 = vmax.f32 %v2574_v25, 0.0  ;;  %v2673_v21 = vld [vmem:[%s3581_s2 + $0xa0] ss:$16 sps:$4 sm:$0xff]  }
 0x12d   :  { %v2575_v27 = vpop.f32.mrb[42].mxu0  ;;  %v685_v33 = vmax.f32 %v550_v26, 0.0  ;;  %959 = vperm.xlu0 %2619, %v829_v47   ;;  %v817_v26 = vld [vmem:[%s3582_s3 + $0x60] sm:$0xff] }
 0x12e   :  { %v688_v29 = vmax.f32 %v2575_v27, 0.0  ;;  %v553_v30 = vpop.f32.mrb[43].mxu0  ;;  %964 = vperm.xlu1 %2620, %v830_v56   ;;  %v2689_v56 = vld [vmem:[%s3581_s2 + $0x104] ss:$16 sps:$4 sm:$0xff]  }
 0x12f   :  { %v686_v34 = vmax.f32 %v553_v30, 0.0 }
 0x130   :  { %v3032_v36 = vpack.c.bf16 %v688_v29, %v687_v28  ;;  %v834_v28 = vld [vmem:[%s3582_s3 + $0xe8] sm:$0xff] }
 0x131   :  { %v3037_v38 = vpack.c.bf16 %v686_v34, %v685_v33  ;;  %879 = vperm.xlu0 %2619, %v813_v55   ;;  %v835_v33 = vld [vmem:[%s3582_s3 + $0xf0] sm:$0xff] }
 0x132   :  { %884 = vperm.xlu1 %2620, %v814_v0   ;;  %v2695_v0 = vld [vmem:[%s3581_s2 + $0x124] ss:$16 sps:$4 sm:$0xff]  }
 0x133   :  { %v2578_v41 = vpop.f32.mrb[44].mxu0  ;;  %1366 = vmatmul.mubr.bf16.gmra.mrb[8].mxu1 %v2661_v35 }
 0x134   :  { %v566_v42 = vpop.f32.mrb[45].mxu0  ;;  %1373 = vmatprep.mubr.bf16.mxu1 %v2662_v37  ;;  %v691_v45 = vmax.f32 %v2578_v41, 0.0  ;;  %v2679_v37 = vld [vmem:[%s3581_s2 + $0xc0] ss:$16 sps:$4 sm:$0xff]  }
 0x135   :  { %v2579_v43 = vpop.f32.mrb[46].mxu0  ;;  %v689_v49 = vmax.f32 %v566_v42, 0.0  ;;  %969 = vperm.xlu0 %2619, %v831_v63   ;;  %v819_v42 = vld [vmem:[%s3582_s3 + $0x70] sm:$0xff]  ;;  %v2674_v63 = vld [vmem:[%s3581_s2 + $0x2c] ss:$16 sps:$4 sm:$0xff]  }
 0x136   :  { %v692_v44 = vmax.f32 %v2579_v43, 0.0  ;;  %v569_v46 = vpop.f32.mrb[47].mxu0  ;;  %974 = vperm.xlu1 %2620, %v832_v11   ;;  %v1712_v11 = vld [vmem:[%s3583_s5 + $0x48] sm:$0xff] }
 0x137   :  { %v690_v50 = vmax.f32 %v569_v46, 0.0 }
 0x138   :  { %v3054_v52 = vpack.c.bf16 %v692_v44, %v691_v45  ;;  %v836_v45 = vld [vmem:[%s3582_s3 + $0xf8] sm:$0xff] }
 0x139   :  { %v3059_v54 = vpack.c.bf16 %v690_v50, %v689_v49  ;;  %889 = vperm.xlu0 %2619, %v815_v9   ;;  %v1703_v49 = vld [vmem:[%s3583_s5] sm:$0xff] }
 0x13a   :  { %v2701_v9 = vld [vmem:[%s3581_s2 + $0x144] ss:$16 sps:$4 sm:$0xff]  }
 0x13b   :  { %v2582_v57 = vpop.f32.mrb[48].mxu0  ;;  %1374 = vmatmul.mubr.bf16.gmra.mrb[12].mxu1 %v2664_v51 }
 0x13c   :  { %v582_v58 = vpop.f32.mrb[49].mxu0  ;;  %1381 = vmatprep.mubr.bf16.mxu1 %v2665_v53  ;;  %v695_v60 = vmax.f32 %v2582_v57, 0.0  ;;  %v2685_v53 = vld [vmem:[%s3581_s2 + $0xe0] ss:$16 sps:$4 sm:$0xff]  }
 0x13d   :  { %v2583_v59 = vpop.f32.mrb[50].mxu0  ;;  %v693_v1 = vmax.f32 %v582_v58, 0.0  ;;  %979 = vperm.xlu0 %2619, %v833_v17   ;;  %v1705_v58 = vld [vmem:[%s3583_s5 + $0x10] sm:$0xff] }
 0x13e   :  { %v696_v61 = vmax.f32 %v2583_v59, 0.0  ;;  %v585_v62 = vpop.f32.mrb[51].mxu0  ;;  %v1704_v59 = vld [vmem:[%s3583_s5 + $0x8] sm:$0xff]  ;;  %v2707_v17 = vld [vmem:[%s3581_s2 + $0x164] ss:$16 sps:$4 sm:$0xff]  }
 0x13f   :  { %v694_v2 = vmax.f32 %v585_v62, 0.0  ;;  %v1706_v62 = vld [vmem:[%s3583_s5 + $0x18] sm:$0xff] }
 0x140   :  { %v734_v5 = vpack.c.bf16 %v696_v61, %v695_v60  ;;  %v1707_v60 = vld [vmem:[%s3583_s5 + $0x20] sm:$0xff]  ;;  %v2668_v61 = vld [vmem:[%s3581_s2 + $0x8] ss:$16 sps:$4 sm:$0xff]  }
 0x141   :  { %v733_v8 = vpack.c.bf16 %v694_v2, %v693_v1  ;;  %899 = vperm.xlu0 %2619, %v817_v26   ;;  %v1709_v1 = vld [vmem:[%s3583_s5 + $0x30] sm:$0xff]  ;;  %v1711_v2 = vld [vmem:[%s3583_s5 + $0x40] sm:$0xff] }
 0x142   :  { %v2713_v26 = vld [vmem:[%s3581_s2 + $0x184] ss:$16 sps:$4 sm:$0xff]  }
 0x143   :  { %v2586_v10 = vpop.f32.mrb[52].mxu0  ;;  %2345 = vmatprep.subr.bf16.mxu0 %v733_v8  ;;  %1382 = vmatmul.mubr.bf16.gmra.mrb[16].mxu1 %v2667_v3  ;;  %v2676_v3 = vld [vmem:[%s3581_s2 + $0x28] ss:$16 sps:$4 sm:$0xff]   ;;  %v2680_v8 = vld [vmem:[%s3581_s2 + $0x4c] ss:$16 sps:$4 sm:$0xff]  }
 0x144   :  { %v598_v12 = vpop.f32.mrb[53].mxu0  ;;  %2346 = vmatpush3.bf16.msra.mxu0 %v2993_v6  ;;  %1389 = vmatprep.mubr.bf16.mxu1 %v2671_v7  ;;  %v699_v14 = vmax.f32 %v2586_v10, 0.0  ;;  %v816_v6 = vld [vmem:[%s3582_s3 + $0x58] sm:$0xff]  ;;  %v1713_v10 = vld [vmem:[%s3583_s5 + $0x50] sm:$0xff] }
 0x145   :  { %v2587_v13 = vpop.f32.mrb[54].mxu0  ;;  %2347 = vmatprep.subr.bf16.mxu0 %v734_v5  ;;  %v697_v18 = vmax.f32 %v598_v12, 0.0  ;;  %894 = vperm.xlu1 %2620, %v816_v6   ;;  %v2697_v5 = vld [vmem:[%s3581_s2 + $0x120] ss:$16 sps:$4 sm:$0xff]   ;;  %v1710_v7 = vld [vmem:[%s3583_s5 + $0x38] sm:$0xff] }
 0x146   :  { %v700_v15 = vmax.f32 %v2587_v13, 0.0  ;;  %v601_v16 = vpop.f32.mrb[55].mxu0  ;;  %989 = vperm.xlu0 %2619, %v835_v33   ;;  %v1715_v12 = vld [vmem:[%s3583_s5 + $0x60] sm:$0xff]  ;;  %v2682_v13 = vld [vmem:[%s3581_s2 + $0x48] ss:$16 sps:$4 sm:$0xff]  }
 0x147   :  { %v698_v19 = vmax.f32 %v601_v16, 0.0  ;;  %v2686_v16 = vld [vmem:[%s3581_s2 + $0x6c] ss:$16 sps:$4 sm:$0xff]   ;;  %v2688_v6 = vld [vmem:[%s3581_s2 + $0x68] ss:$16 sps:$4 sm:$0xff]  }
 0x148   :  { %v736_v23 = vpack.c.bf16 %v700_v15, %v699_v14  ;;  %2348 = vmatpush3.bf16.msra.mxu0 %v2987_v4  ;;  %v2703_v14 = vld [vmem:[%s3581_s2 + $0x140] ss:$16 sps:$4 sm:$0xff]   ;;  %v1714_v15 = vld [vmem:[%s3583_s5 + $0x58] sm:$0xff]  ;;  %v2725_v33 = vld [vmem:[%s3581_s2 + $0x1c4] ss:$16 sps:$4 sm:$0xff]  }
 0x149   :  { %v735_v25 = vpack.c.bf16 %v698_v19, %v697_v18  ;;  %984 = vperm.xlu1 %2620, %v834_v28   ;;  %v1717_v18 = vld [vmem:[%s3583_s5 + $0x70] sm:$0xff]  ;;  %v1716_v19 = vld [vmem:[%s3583_s5 + $0x68] sm:$0xff] }
 0x14a   :  { %909 = vperm.xlu0 %2619, %v819_v42   ;;  %v2715_v28 = vld [vmem:[%s3581_s2 + $0x180] ss:$16 sps:$4 sm:$0xff]   ;;  %v2718_v42 = vld [vmem:[%s3581_s2 + $0x108] ss:$16 sps:$4 sm:$0xff]  }
 0x14b   :  { %v2590_v27 = vpop.f32.mrb[56].mxu0  ;;  %2349 = vmatprep.subr.bf16.mxu0 %v735_v25  ;;  %1390 = vmatmul.mubr.bf16.gmra.mrb[20].mxu1 %v2673_v21  ;;  %v2692_v25 = vld [vmem:[%s3581_s2 + $0x8c] ss:$16 sps:$4 sm:$0xff]  }
 0x14c   :  { %v614_v29 = vpop.f32.mrb[57].mxu0  ;;  %2350 = vmatpush3.bf16.msra.mxu0 %v3015_v22  ;;  %1397 = vmatprep.mubr.bf16.mxu1 %v2677_v24  ;;  %v703_v30 = vmax.f32 %v2590_v27, 0.0  ;;  %v818_v22 = vld [vmem:[%s3582_s3 + $0x68] sm:$0xff]  ;;  %v1718_v24 = vld [vmem:[%s3583_s5 + $0x78] sm:$0xff] }
 0x14d   :  { %v2591_v4 = vpop.f32.mrb[58].mxu0  ;;  %2351 = vmatprep.subr.bf16.mxu0 %v736_v23  ;;  %v701_v34 = vmax.f32 %v614_v29, 0.0  ;;  %904 = vperm.xlu1 %2620, %v818_v22   ;;  %v2709_v23 = vld [vmem:[%s3581_s2 + $0x160] ss:$16 sps:$4 sm:$0xff]   ;;  %v2694_v27 = vld [vmem:[%s3581_s2 + $0x88] ss:$16 sps:$4 sm:$0xff]  }
 0x14e   :  { %v704_v31 = vmax.f32 %v2591_v4, 0.0  ;;  %v617_v32 = vpop.f32.mrb[59].mxu0  ;;  %1721 = vperm.xlu0 %2619, %v1703_v49   ;;  %v2698_v29 = vld [vmem:[%s3581_s2 + $0xac] ss:$16 sps:$4 sm:$0xff]   ;;  %v2719_v4 = vld [vmem:[%s3581_s2 + $0x1a4] ss:$16 sps:$4 sm:$0xff]  }
 0x14f   :  { %v702_v35 = vmax.f32 %v617_v32, 0.0  ;;  %v2704_v32 = vld [vmem:[%s3581_s2 + $0xcc] ss:$16 sps:$4 sm:$0xff]   ;;  %v2731_v22 = vld [vmem:[%s3581_s2 + $0x1e4] ss:$16 sps:$4 sm:$0xff]  }
 0x150   :  { %v738_v39 = vpack.c.bf16 %v704_v31, %v703_v30  ;;  %2352 = vmatpush3.bf16.msra.mxu0 %v3010_v20  ;;  %v2700_v30 = vld [vmem:[%s3581_s2 + $0xa8] ss:$16 sps:$4 sm:$0xff]   ;;  %v2721_v31 = vld [vmem:[%s3581_s2 + $0x1a0] ss:$16 sps:$4 sm:$0xff]  }
 0x151   :  { %v737_v41 = vpack.c.bf16 %v702_v35, %v701_v34  ;;  %994 = vperm.xlu1 %2620, %v836_v45   ;;  %v2706_v34 = vld [vmem:[%s3581_s2 + $0xc8] ss:$16 sps:$4 sm:$0xff]   ;;  %v2727_v35 = vld [vmem:[%s3581_s2 + $0x1c0] ss:$16 sps:$4 sm:$0xff]  }
 0x152   :  { %1731 = vperm.xlu0 %2619, %v1705_v58   ;;  %v2724_v45 = vld [vmem:[%s3581_s2 + $0x128] ss:$16 sps:$4 sm:$0xff]  }
 0x153   :  { %v2594_v43 = vpop.f32.mrb[60].mxu0  ;;  %2353 = vmatprep.subr.bf16.mxu0 %v737_v41  ;;  %1398 = vmatmul.mubr.bf16.gmra.mrb[24].mxu1 %v2679_v37  ;;  %v2710_v37 = vld [vmem:[%s3581_s2 + $0xec] ss:$16 sps:$4 sm:$0xff]   ;;  %v2739_v49 = vld [vmem:[%s3581_s2 + $0x188] ss:$16 sps:$4 sm:$0xff]  }
 0x154   :  { %v630_v44 = vpop.f32.mrb[61].mxu0  ;;  %2354 = vmatpush3.bf16.msra.mxu0 %v3037_v38  ;;  %1405 = vmatprep.mubr.bf16.mxu1 %v2683_v40  ;;  %v707_v46 = vmax.f32 %v2594_v43, 0.0  ;;  %v820_v38 = vld [vmem:[%s3582_s3 + $0x78] sm:$0xff]  ;;  %v2733_v40 = vld [vmem:[%s3581_s2 + $0x1e0] ss:$16 sps:$4 sm:$0xff]  }
 0x155   :  { %v2595_v20 = vpop.f32.mrb[62].mxu0  ;;  %2355 = vmatprep.subr.bf16.mxu0 %v738_v39  ;;  %v705_v50 = vmax.f32 %v630_v44, 0.0  ;;  %914 = vperm.xlu1 %2620, %v820_v38   ;;  %v2712_v39 = vld [vmem:[%s3581_s2 + $0xe8] ss:$16 sps:$4 sm:$0xff]   ;;  %v2716_v41 = vld [vmem:[%s3581_s2 + $0x10c] ss:$16 sps:$4 sm:$0xff]  }
 0x156   :  { %v708_v47 = vmax.f32 %v2595_v20, 0.0  ;;  %v633_v48 = vpop.f32.mrb[63].mxu0  ;;  %1741 = vperm.xlu0 %2619, %v1707_v60   ;;  %v2722_v43 = vld [vmem:[%s3581_s2 + $0x12c] ss:$16 sps:$4 sm:$0xff]   ;;  %v2730_v20 = vld [vmem:[%s3581_s2 + $0x148] ss:$16 sps:$4 sm:$0xff]  }
 0x157   :  { %v706_v51 = vmax.f32 %v633_v48, 0.0  ;;  %v2728_v44 = vld [vmem:[%s3581_s2 + $0x14c] ss:$16 sps:$4 sm:$0xff]   ;;  %v2745_v38 = vld [vmem:[%s3581_s2 + $0x1c8] ss:$16 sps:$4 sm:$0xff]  }
 0x158   :  { %v740_v55 = vpack.c.bf16 %v708_v47, %v707_v46  ;;  %2356 = vmatpush3.bf16.msra.mxu0 %v3032_v36  ;;  %v13_v36 = vstv %s3584_s7  ;;  %v2734_v46 = vld [vmem:[%s3581_s2 + $0x16c] ss:$16 sps:$4 sm:$0xff]   ;;  %v2736_v47 = vld [vmem:[%s3581_s2 + $0x168] ss:$16 sps:$4 sm:$0xff]  }
 0x159   :  { %v739_v57 = vpack.c.bf16 %v706_v51, %v705_v50  ;;  %14 = vst [vmem:[#allocation2] sm:$0x1] %v13_v36  ;;  %1726 = vperm.xlu1 %2620, %v1704_v59   ;;  %v2737_v48 = vld [vmem:[%s3581_s2 + $0x18c] ss:$16 sps:$4 sm:$0xff]   ;;  %v2742_v51 = vld [vmem:[%s3581_s2 + $0x1a8] ss:$16 sps:$4 sm:$0xff]  }
 0x15a   :  { %1751 = vperm.xlu0 %2619, %v1709_v1   ;;  %v2740_v50 = vld [vmem:[%s3581_s2 + $0x1ac] ss:$16 sps:$4 sm:$0xff]  }
 0x15b   :  { %2357 = vmatprep.subr.bf16.mxu0 %v739_v57  ;;  %1406 = vmatmul.mubr.bf16.gmra.mrb[28].mxu1 %v2685_v53  ;;  %v2743_v53 = vld [vmem:[%s3581_s2 + $0x1cc] ss:$16 sps:$4 sm:$0xff]  }
 0x15c   :  { %2358 = vmatpush3.bf16.msra.mxu0 %v3059_v54  ;;  %1413 = vmatprep.mubr.bf16.mxu1 %v2689_v56  ;;  %v2691_v54 = vld [vmem:[%s3581_s2 + $0x100] ss:$16 sps:$4 sm:$0xff]   ;;  %v2748_v56 = vld [vmem:[%s3581_s2 + $0x1e8] ss:$16 sps:$4 sm:$0xff]  }
 0x15d   :  { %2359 = vmatprep.subr.bf16.mxu0 %v740_v55  ;;  %1736 = vperm.xlu1 %2620, %v1706_v62   ;;  %v2746_v55 = vld [vmem:[%s3581_s2 + $0x1ec] ss:$16 sps:$4 sm:$0xff]  }
 0x15e   :  { %1761 = vperm.xlu0 %2619, %v1711_v2  }
 0x160   :  { %2360 = vmatpush3.bf16.msra.mxu0 %v3054_v52  ;;  %v1708_v52 = vld [vmem:[%s3583_s5 + $0x28] sm:$0xff]  ;;  %v2001_v21 = vld [vmem:[#allocation2] sm:$0x1] }
 0x161   :  { %1746 = vperm.xlu1 %2620, %v1708_v52  }
 0x162   :  { %1771 = vperm.xlu0 %2619, %v1713_v10  }
 0x163   :  { %1511 = vmatmul.mubr.bf16.vlgmr.msra.gmra.mrb[64].mxu0 %v2668_v61  ;;  %1414 = vmatmul.mubr.bf16.gmra.mrb[32].mxu1 %v2691_v54 }
 0x164   :  { %1518 = vmatprep.mubr.bf16.mxu0 %v2674_v63  ;;  %1421 = vmatprep.mubr.bf16.mxu1 %v2695_v0 }
 0x165   :  { %1756 = vperm.xlu1 %2620, %v1710_v7  }
 0x166   :  { %1781 = vperm.xlu0 %2619, %v1715_v12  }
 0x168   :  { %v3335_v2 = vpop.permute.xlu0 %919 }
 0x169   :  { %1766 = vperm.xlu1 %2620, %v1712_v11  }
 0x16a   :  { %1791 = vperm.xlu0 %2619, %v1717_v18  }
 0x16b   :  { %1519 = vmatmul.mubr.bf16.gmra.mrb[68].mxu0 %v2676_v3  ;;  %1422 = vmatmul.mubr.bf16.gmra.mrb[36].mxu1 %v2697_v5 }
 0x16c   :  { %1526 = vmatprep.mubr.bf16.mxu0 %v2680_v8  ;;  %1429 = vmatprep.mubr.bf16.mxu1 %v2701_v9 }
 0x16d   :  { %1776 = vperm.xlu1 %2620, %v1714_v15  }
 0x16e   :  { %2004 = vperm.xlu0 %2619, %v2001_v21  }
 0x171   :  { %1786 = vperm.xlu1 %2620, %v1716_v19  }
 0x173   :  { %1527 = vmatmul.mubr.bf16.gmra.mrb[72].mxu0 %v2682_v13  ;;  %1430 = vmatmul.mubr.bf16.gmra.mrb[40].mxu1 %v2703_v14 }
 0x174   :  { %1534 = vmatprep.mubr.bf16.mxu0 %v2686_v16  ;;  %1437 = vmatprep.mubr.bf16.mxu1 %v2707_v17 }
 0x175   :  { %1796 = vperm.xlu1 %2620, %v1718_v24  }
 0x17b   :  { %1535 = vmatmul.mubr.bf16.gmra.mrb[76].mxu0 %v2688_v6  ;;  %1438 = vmatmul.mubr.bf16.gmra.mrb[44].mxu1 %v2709_v23 }
 0x17c   :  { %1542 = vmatprep.mubr.bf16.mxu0 %v2692_v25  ;;  %1445 = vmatprep.mubr.bf16.mxu1 %v2713_v26 }
 0x183   :  { %1543 = vmatmul.mubr.bf16.gmra.mrb[80].mxu0 %v2694_v27  ;;  %1446 = vmatmul.mubr.bf16.gmra.mrb[48].mxu1 %v2715_v28 }
 0x184   :  { %1550 = vmatprep.mubr.bf16.mxu0 %v2698_v29  ;;  %1453 = vmatprep.mubr.bf16.mxu1 %v2719_v4 }
 0x18b   :  { %1551 = vmatmul.mubr.bf16.gmra.mrb[84].mxu0 %v2700_v30  ;;  %1454 = vmatmul.mubr.bf16.gmra.mrb[52].mxu1 %v2721_v31 }
 0x18c   :  { %1558 = vmatprep.mubr.bf16.mxu0 %v2704_v32  ;;  %1461 = vmatprep.mubr.bf16.mxu1 %v2725_v33  ;;  %v840_v3 = vpop.permute.xlu1 %839 }
 0x190   :  { %v3339_v11 = vpop.permute.xlu0 %924  ;;  %v845_v13 = vpop.permute.xlu1 %844 }
 0x193   :  { %1559 = vmatmul.mubr.bf16.gmra.mrb[88].mxu0 %v2706_v34  ;;  %1462 = vmatmul.mubr.bf16.gmra.mrb[56].mxu1 %v2727_v35 }
 0x194   :  { %1566 = vmatprep.mubr.bf16.mxu0 %v2710_v37  ;;  %1469 = vmatprep.mubr.bf16.mxu1 %v2731_v22  ;;  %v3343_v16 = vpop.permute.xlu0 %929 }
 0x195   :  { %v3347_v19 = vpop.permute.xlu1 %934 }
 0x198   :  { %v850_v23 = vpop.permute.xlu0 %849 }
 0x199   :  { %v3351_v25 = vpop.permute.xlu1 %854 }
 0x19b   :  { %1567 = vmatmul.mubr.bf16.gmra.mrb[92].mxu0 %v2712_v39  ;;  %1470 = vmatmul.mubr.bf16.gmra.mrb[60].mxu1 %v2733_v40 }
 0x19c   :  { %1574 = vmatprep.mubr.bf16.mxu0 %v2716_v41  ;;  %v3357_v30 = vpop.permute.xlu0 %939 }
 0x19d   :  { %v3359_v31 = vpop.permute.xlu1 %944 }
 0x1a0   :  { %v3363_v22 = vpop.permute.xlu0 %859 }
 0x1a1   :  { %v3367_v40 = vpop.permute.xlu1 %864 }
 0x1a3   :  { %1575 = vmatmul.mubr.bf16.gmra.mrb[96].mxu0 %v2718_v42 }
 0x1a4   :  { %1582 = vmatprep.mubr.bf16.mxu0 %v2722_v43  ;;  %v3369_v43 = vpop.permute.xlu0 %949 }
 0x1ab   :  { %1583 = vmatmul.mubr.bf16.gmra.mrb[100].mxu0 %v2724_v45 }
 0x1ac   :  { %1590 = vmatprep.mubr.bf16.mxu0 %v2728_v44 }
 0x1b3   :  { %1591 = vmatmul.mubr.bf16.gmra.mrb[104].mxu0 %v2730_v20  ;;  %v3373_v20 = vpop.permute.xlu1 %954 }
 0x1b4   :  { %1598 = vmatprep.mubr.bf16.mxu0 %v2734_v46 }
 0x1bb   :  { %1599 = vmatmul.mubr.bf16.gmra.mrb[108].mxu0 %v2736_v47 }
 0x1bc   :  { %1606 = vmatprep.mubr.bf16.mxu0 %v2737_v48  ;;  %v3377_v48 = vpop.permute.xlu0 %869 }
 0x1c3   :  { %1607 = vmatmul.mubr.bf16.gmra.mrb[112].mxu0 %v2739_v49 }
 0x1c4   :  { %1614 = vmatprep.mubr.bf16.mxu0 %v2740_v50  ;;  %v3379_v50 = vpop.permute.xlu1 %874 }
 0x1cb   :  { %1615 = vmatmul.mubr.bf16.gmra.mrb[116].mxu0 %v2742_v51 }
 0x1cc   :  { %1622 = vmatprep.mubr.bf16.mxu0 %v2743_v53 }
 0x1d3   :  { %1623 = vmatmul.mubr.bf16.gmra.mrb[120].mxu0 %v2745_v38 }
 0x1d4   :  { %1630 = vmatprep.mubr.bf16.mxu0 %v2746_v55 }
 0x1db   :  { %1631 = vmatmul.mubr.bf16.gmra.mrb[124].mxu0 %v2748_v56 }
 0x1f6   :  { %v2249_v57 = vpop.f32.mrb[0].mxu1 }
 0x1f7   :  { %v2250_v58 = vpop.f32.mrb[1].mxu1 }
 0x1f8   :  { %v3327_v59 = vadd.f32 %v2250_v58, %v2249_v57  ;;  %v2252_v36 = vpop.f32.mrb[2].mxu1  ;;  %v3385_v57 = vpop.permute.xlu0 %959 }
 0x1f9   :  { %v2253_v60 = vpop.f32.mrb[3].mxu1  ;;  %v3387_v58 = vpop.permute.xlu1 %964 }
 0x1fa   :  { %v3329_v61 = vadd.f32 %v2253_v60, %v2252_v36  ;;  %v1352_v36 = vadd.f32 %v3327_v59, %v840_v3  ;;  %v2751_v59 = vld [vmem:[%s3585_s4 + $0x4] ss:$8 sps:$4 sm:$0xff]  }
 0x1fb   :  { %1911 = vmatprep.mubr.bf16.mxu1 %v2751_v59 }
 0x1fc   :  { %v3398_v3 = vpop.permute.xlu0 %879 }
 0x1fe   :  { %v2255_v54 = vpop.f32.mrb[4].mxu1 }
 0x1ff   :  { %v2256_v62 = vpop.f32.mrb[5].mxu1 }
 0x200   :  { %v3331_v63 = vadd.f32 %v2256_v62, %v2255_v54  ;;  %v2258_v0 = vpop.f32.mrb[6].mxu1 }
 0x201   :  { %v2259_v1 = vpop.f32.mrb[7].mxu1 }
 0x202   :  { %v3333_v52 = vadd.f32 %v2259_v1, %v2258_v0 }
 0x206   :  { %v2261_v5 = vpop.f32.mrb[8].mxu1 }
 0x207   :  { %v2262_v7 = vpop.f32.mrb[9].mxu1 }
 0x208   :  { %v3337_v8 = vadd.f32 %v2262_v7, %v2261_v5  ;;  %v2264_v9 = vpop.f32.mrb[10].mxu1 }
 0x209   :  { %v2265_v10 = vpop.f32.mrb[11].mxu1 }
 0x20a   :  { %v3341_v12 = vadd.f32 %v2265_v10, %v2264_v9 }
 0x20e   :  { %v2267_v14 = vpop.f32.mrb[12].mxu1 }
 0x20f   :  { %v2268_v15 = vpop.f32.mrb[13].mxu1 }
 0x210   :  { %v3345_v17 = vadd.f32 %v2268_v15, %v2267_v14  ;;  %v2270_v18 = vpop.f32.mrb[14].mxu1  ;;  %v1355_v15 = vadd.f32 %v3329_v61, %v845_v13 }
 0x211   :  { %v2271_v21 = vpop.f32.mrb[15].mxu1 }
 0x212   :  { %v3349_v6 = vadd.f32 %v2271_v21, %v2270_v18 }
 0x216   :  { %v2273_v24 = vpop.f32.mrb[16].mxu1 }
 0x217   :  { %v2274_v26 = vpop.f32.mrb[17].mxu1 }
 0x218   :  { %v3353_v27 = vadd.f32 %v2274_v26, %v2273_v24  ;;  %v2276_v28 = vpop.f32.mrb[18].mxu1 }
 0x219   :  { %v2277_v29 = vpop.f32.mrb[19].mxu1 }
 0x21a   :  { %v3355_v4 = vadd.f32 %v2277_v29, %v2276_v28  ;;  %v3400_v28 = vpop.permute.xlu1 %884 }
 0x21e   :  { %v2279_v32 = vpop.f32.mrb[20].mxu1 }
 0x21f   :  { %v2280_v33 = vpop.f32.mrb[21].mxu1 }
 0x220   :  { %v3361_v34 = vadd.f32 %v2280_v33, %v2279_v32  ;;  %v2282_v35 = vpop.f32.mrb[22].mxu1  ;;  %v1360_v33 = vadd.f32 %v3331_v63, %v850_v23 }
 0x221   :  { %v2283_v37 = vpop.f32.mrb[23].mxu1 }
 0x222   :  { %v3365_v39 = vadd.f32 %v2283_v37, %v2282_v35 }
 0x226   :  { %v2285_v41 = vpop.f32.mrb[24].mxu1 }
 0x227   :  { %v2286_v42 = vpop.f32.mrb[25].mxu1 }
 0x228   :  { %v3371_v45 = vadd.f32 %v2286_v42, %v2285_v41  ;;  %v2288_v44 = vpop.f32.mrb[26].mxu1 }
 0x229   :  { %v2289_v46 = vpop.f32.mrb[27].mxu1 }
 0x22a   :  { %v3375_v47 = vadd.f32 %v2289_v46, %v2288_v44 }
 0x22e   :  { %v2291_v49 = vpop.f32.mrb[28].mxu1 }
 0x22f   :  { %v2292_v51 = vpop.f32.mrb[29].mxu1 }
 0x230   :  { %v3381_v53 = vadd.f32 %v2292_v51, %v2291_v49  ;;  %v2294_v38 = vpop.f32.mrb[30].mxu1 }
 0x231   :  { %v2295_v55 = vpop.f32.mrb[31].mxu1 }
 0x232   :  { %v3383_v56 = vadd.f32 %v2295_v55, %v2294_v38  ;;  %v1363_v55 = vadd.f32 %v3333_v52, %v3351_v25 }
 0x236   :  { %v2361_v60 = vpop.f32.mrb[64].mxu0  ;;  %v2297_v54 = vpop.f32.mrb[32].mxu1 }
 0x237   :  { %v2362_v62 = vpop.f32.mrb[65].mxu0  ;;  %v2298_v0 = vpop.f32.mrb[33].mxu1 }
 0x238   :  { %v2363_v1 = vadd.f32 %v2362_v62, %v2361_v60  ;;  %v2364_v5 = vpop.f32.mrb[66].mxu0  ;;  %v3390_v7 = vadd.f32 %v2298_v0, %v2297_v54  ;;  %v2300_v9 = vpop.f32.mrb[34].mxu1 }
 0x239   :  { %v2365_v10 = vpop.f32.mrb[67].mxu0  ;;  %v2301_v14 = vpop.f32.mrb[35].mxu1 }
 0x23a   :  { %v1513_v18 = vadd.f32 %v2363_v1, %v1352_v36  ;;  %v2366_v21 = vadd.f32 %v2365_v10, %v2364_v5  ;;  %v3393_v24 = vadd.f32 %v2301_v14, %v2300_v9  ;;  %v3411_v54 = vpop.permute.xlu0 %969  ;;  %v3413_v62 = vpop.permute.xlu1 %974  ;;  %v1368_v1 = vadd.f32 %v3337_v8, %v3363_v22 }
 0x23c   :  { %v1516_v26 = vadd.f32 %v2366_v21, %v1355_v15  ;;  %v1639_v29 = vmax.f32 %v1513_v18, 0.0 }
 0x23e   :  { %v1640_v32 = vmax.f32 %v1516_v26, 0.0  ;;  %v2367_v35 = vpop.f32.mrb[68].mxu0  ;;  %v2303_v37 = vpop.f32.mrb[36].mxu1 }
 0x23f   :  { %v2368_v61 = vpop.f32.mrb[69].mxu0  ;;  %v2304_v13 = vpop.f32.mrb[37].mxu1 }
 0x240   :  { %v3403_v41 = vpack.c.bf16 %v1640_v32, %v1639_v29  ;;  %v2369_v42 = vadd.f32 %v2368_v61, %v2367_v35  ;;  %v2370_v44 = vpop.f32.mrb[70].mxu0  ;;  %v3405_v46 = vadd.f32 %v2304_v13, %v2303_v37  ;;  %v2306_v49 = vpop.f32.mrb[38].mxu1  ;;  %v1371_v32 = vadd.f32 %v3341_v12, %v3367_v40 }
 0x241   :  { %v2371_v51 = vpop.f32.mrb[71].mxu0  ;;  %v2307_v38 = vpop.f32.mrb[39].mxu1  ;;  %v1376_v13 = vadd.f32 %v3345_v17, %v3377_v48 }
 0x242   :  { %v1521_v36 = vadd.f32 %v2369_v42, %v1360_v33  ;;  %v2372_v60 = vadd.f32 %v2371_v51, %v2370_v44  ;;  %v3409_v63 = vadd.f32 %v2307_v38, %v2306_v49  ;;  %v890_v37 = vpop.permute.xlu0 %889  ;;  %v895_v61 = vpop.permute.xlu1 %894 }
 0x244   :  { %v1524_v23 = vadd.f32 %v2372_v60, %v1363_v55  ;;  %v1641_v0 = vmax.f32 %v1521_v36, 0.0 }
 0x246   :  { %v1642_v5 = vmax.f32 %v1524_v23, 0.0  ;;  %v2373_v9 = vpop.f32.mrb[72].mxu0  ;;  %v2309_v10 = vpop.f32.mrb[40].mxu1 }
 0x247   :  { %v2374_v14 = vpop.f32.mrb[73].mxu0  ;;  %v2310_v15 = vpop.f32.mrb[41].mxu1 }
 0x248   :  { %v3417_v18 = vpack.c.bf16 %v1642_v5, %v1641_v0  ;;  %v2375_v52 = vadd.f32 %v2374_v14, %v2373_v9  ;;  %v2376_v25 = vpop.f32.mrb[74].mxu0  ;;  %v3419_v21 = vadd.f32 %v2310_v15, %v2309_v10  ;;  %v2312_v26 = vpop.f32.mrb[42].mxu1  ;;  %v1379_v5 = vadd.f32 %v3349_v6, %v3379_v50 }
 0x249   :  { %v2377_v59 = vpop.f32.mrb[75].mxu0  ;;  %v2313_v29 = vpop.f32.mrb[43].mxu1 }
 0x24a   :  { %v1529_v33 = vadd.f32 %v2375_v52, %v1368_v1  ;;  %v2378_v35 = vadd.f32 %v2377_v59, %v2376_v25  ;;  %v3423_v8 = vadd.f32 %v2313_v29, %v2312_v26  ;;  %v3435_v14 = vpop.permute.xlu0 %979  ;;  %v3437_v15 = vpop.permute.xlu1 %984  ;;  %v1384_v52 = vadd.f32 %v3353_v27, %v3398_v3 }
 0x24c   :  { %v1532_v22 = vadd.f32 %v2378_v35, %v1371_v32  ;;  %v1643_v42 = vmax.f32 %v1529_v33, 0.0 }
 0x24e   :  { %v1644_v44 = vmax.f32 %v1532_v22, 0.0  ;;  %v2379_v49 = vpop.f32.mrb[76].mxu0  ;;  %v2315_v51 = vpop.f32.mrb[44].mxu1 }
 0x24f   :  { %v2380_v38 = vpop.f32.mrb[77].mxu0  ;;  %v2316_v55 = vpop.f32.mrb[45].mxu1 }
 0x250   :  { %v3427_v36 = vpack.c.bf16 %v1644_v44, %v1643_v42  ;;  %v2381_v60 = vadd.f32 %v2380_v38, %v2379_v49  ;;  %v2382_v12 = vpop.f32.mrb[78].mxu0  ;;  %v3429_v40 = vadd.f32 %v2316_v55, %v2315_v51  ;;  %v2318_v23 = vpop.f32.mrb[46].mxu1  ;;  %v1387_v49 = vadd.f32 %v3355_v4, %v3400_v28 }
 0x251   :  { %v2383_v0 = vpop.f32.mrb[79].mxu0  ;;  %v2319_v1 = vpop.f32.mrb[47].mxu1 }
 0x252   :  { %v1537_v9 = vadd.f32 %v2381_v60, %v1376_v13  ;;  %v2384_v17 = vadd.f32 %v2383_v0, %v2382_v12  ;;  %v3433_v48 = vadd.f32 %v2319_v1, %v2318_v23  ;;  %v900_v55 = vpop.permute.xlu0 %899  ;;  %v905_v60 = vpop.permute.xlu1 %904  ;;  %v1392_v12 = vadd.f32 %v3361_v34, %v890_v37 }
 0x254   :  { %v1540_v10 = vadd.f32 %v2384_v17, %v1379_v5  ;;  %v1645_v25 = vmax.f32 %v1537_v9, 0.0 }
 0x256   :  { %v1646_v26 = vmax.f32 %v1540_v10, 0.0  ;;  %v2385_v59 = vpop.f32.mrb[80].mxu0  ;;  %v2321_v29 = vpop.f32.mrb[48].mxu1 }
 0x257   :  { %v2386_v32 = vpop.f32.mrb[81].mxu0  ;;  %v2322_v33 = vpop.f32.mrb[49].mxu1 }
 0x258   :  { %v3441_v35 = vpack.c.bf16 %v1646_v26, %v1645_v25  ;;  %v2387_v6 = vadd.f32 %v2386_v32, %v2385_v59  ;;  %v2388_v50 = vpop.f32.mrb[82].mxu0  ;;  %v3443_v22 = vadd.f32 %v2322_v33, %v2321_v29  ;;  %v2324_v13 = vpop.f32.mrb[50].mxu1  ;;  %v1395_v29 = vadd.f32 %v3365_v39, %v895_v61 }
 0x259   :  { %v2389_v42 = vpop.f32.mrb[83].mxu0  ;;  %v2325_v44 = vpop.f32.mrb[51].mxu1 }
 0x25a   :  { %v1545_v51 = vadd.f32 %v2387_v6, %v1384_v52  ;;  %v2390_v27 = vadd.f32 %v2389_v42, %v2388_v50  ;;  %v3447_v3 = vadd.f32 %v2325_v44, %v2324_v13  ;;  %v3457_v6 = vpop.permute.xlu0 %989  ;;  %v3459_v50 = vpop.permute.xlu1 %994  ;;  %v1400_v13 = vadd.f32 %v3371_v45, %v900_v55 }
 0x25c   :  { %v1548_v38 = vadd.f32 %v2390_v27, %v1387_v49  ;;  %v1647_v23 = vmax.f32 %v1545_v51, 0.0 }
 0x25e   :  { %v1648_v0 = vmax.f32 %v1548_v38, 0.0  ;;  %v2391_v1 = vpop.f32.mrb[84].mxu0  ;;  %v2327_v5 = vpop.f32.mrb[52].mxu1 }
 0x25f   :  { %v2392_v9 = vpop.f32.mrb[85].mxu0  ;;  %v2328_v17 = vpop.f32.mrb[53].mxu1 }
 0x260   :  { %v3450_v10 = vpack.c.bf16 %v1648_v0, %v1647_v23  ;;  %v2393_v25 = vadd.f32 %v2392_v9, %v2391_v1  ;;  %v2394_v26 = vpop.f32.mrb[86].mxu0  ;;  %v3452_v4 = vadd.f32 %v2328_v17, %v2327_v5  ;;  %v2330_v28 = vpop.f32.mrb[54].mxu1  ;;  %v1403_v9 = vadd.f32 %v3375_v47, %v905_v60 }
 0x261   :  { %v2395_v52 = vpop.f32.mrb[87].mxu0  ;;  %v2331_v59 = vpop.f32.mrb[55].mxu1 }
 0x262   :  { %v1553_v32 = vadd.f32 %v2393_v25, %v1392_v12  ;;  %v2396_v33 = vadd.f32 %v2395_v52, %v2394_v26  ;;  %v3455_v34 = vadd.f32 %v2331_v59, %v2330_v28  ;;  %v910_v26 = vpop.permute.xlu0 %909  ;;  %v915_v28 = vpop.permute.xlu1 %914 }
 0x263   :  { %v1408_v52 = vadd.f32 %v3381_v53, %v910_v26 }
 0x264   :  { %v1556_v37 = vadd.f32 %v2396_v33, %v1395_v29  ;;  %v1649_v42 = vmax.f32 %v1553_v32, 0.0 }
 0x266   :  { %v1650_v44 = vmax.f32 %v1556_v37, 0.0  ;;  %v2397_v49 = vpop.f32.mrb[88].mxu0  ;;  %v2333_v51 = vpop.f32.mrb[56].mxu1 }
 0x267   :  { %v2398_v27 = vpop.f32.mrb[89].mxu0  ;;  %v2334_v38 = vpop.f32.mrb[57].mxu1 }
 0x268   :  { %v3462_v23 = vpack.c.bf16 %v1650_v44, %v1649_v42  ;;  %v2399_v39 = vadd.f32 %v2398_v27, %v2397_v49  ;;  %v2400_v61 = vpop.f32.mrb[90].mxu0  ;;  %v3464_v12 = vadd.f32 %v2334_v38, %v2333_v51  ;;  %v2336_v0 = vpop.f32.mrb[58].mxu1  ;;  %v1411_v38 = vadd.f32 %v3383_v56, %v915_v28 }
 0x269   :  { %v2401_v1 = vpop.f32.mrb[91].mxu0  ;;  %v2337_v5 = vpop.f32.mrb[59].mxu1  ;;  %v1419_v56 = vadd.f32 %v3393_v24, %v3339_v11 }
 0x26a   :  { %v1561_v17 = vadd.f32 %v2399_v39, %v1400_v13  ;;  %v2402_v25 = vadd.f32 %v2401_v1, %v2400_v61  ;;  %v3467_v45 = vadd.f32 %v2337_v5, %v2336_v0  ;;  %v1416_v1 = vadd.f32 %v3390_v7, %v3335_v2 }
 0x26b   :  { %v1424_v2 = vadd.f32 %v3405_v46, %v3343_v16  ;;  %v1432_v16 = vadd.f32 %v3419_v21, %v3357_v30  ;;  %v1440_v30 = vadd.f32 %v3429_v40, %v3369_v43  ;;  %v1448_v43 = vadd.f32 %v3443_v22, %v3385_v57 }
 0x26c   :  { %v1564_v55 = vadd.f32 %v2402_v25, %v1403_v9  ;;  %v1651_v59 = vmax.f32 %v1561_v17, 0.0  ;;  %v1456_v57 = vadd.f32 %v3452_v4, %v3411_v54  ;;  %v1464_v54 = vadd.f32 %v3464_v12, %v3435_v14 }
 0x26e   :  { %v1652_v29 = vmax.f32 %v1564_v55, 0.0  ;;  %v2403_v32 = vpop.f32.mrb[92].mxu0  ;;  %v2339_v33 = vpop.f32.mrb[60].mxu1 }
 0x26f   :  { %v2404_v37 = vpop.f32.mrb[93].mxu0  ;;  %v2340_v42 = vpop.f32.mrb[61].mxu1 }
 0x270   :  { %v3470_v44 = vpack.c.bf16 %v1652_v29, %v1651_v59  ;;  %v2405_v49 = vadd.f32 %v2404_v37, %v2403_v32  ;;  %v2406_v51 = vpop.f32.mrb[94].mxu0  ;;  %v3472_v47 = vadd.f32 %v2340_v42, %v2339_v33  ;;  %v2342_v60 = vpop.f32.mrb[62].mxu1 }
 0x271   :  { %v2407_v13 = vpop.f32.mrb[95].mxu0  ;;  %v2343_v27 = vpop.f32.mrb[63].mxu1 }
 0x272   :  { %v1569_v39 = vadd.f32 %v2405_v49, %v1408_v52  ;;  %v2408_v61 = vadd.f32 %v2407_v13, %v2406_v51  ;;  %v3475_v53 = vadd.f32 %v2343_v27, %v2342_v60  ;;  %v1427_v27 = vadd.f32 %v3409_v63, %v3347_v19 }
 0x273   :  { %v1435_v19 = vadd.f32 %v3423_v8, %v3359_v31  ;;  %v1443_v31 = vadd.f32 %v3433_v48, %v3373_v20  ;;  %v1451_v20 = vadd.f32 %v3447_v3, %v3387_v58  ;;  %v1459_v58 = vadd.f32 %v3455_v34, %v3413_v62 }
 0x274   :  { %v1572_v0 = vadd.f32 %v2408_v61, %v1411_v38  ;;  %v1653_v5 = vmax.f32 %v1569_v39, 0.0  ;;  %v1467_v62 = vadd.f32 %v3467_v45, %v3437_v15  ;;  %v1472_v14 = vadd.f32 %v3472_v47, %v3457_v6  ;;  %v2749_v6 = vld [vmem:[%s3585_s4] ss:$8 sps:$4 sm:$0xff]   ;;  %v2755_v47 = vld [vmem:[%s3585_s4 + $0x24] ss:$8 sps:$4 sm:$0xff]  }
 0x275   :  { %v1475_v15 = vadd.f32 %v3475_v53, %v3459_v50  ;;  %v2752_v50 = vld [vmem:[%s3585_s4 + $0x14] ss:$8 sps:$4 sm:$0xff]   ;;  %v2757_v53 = vld [vmem:[%s3585_s4 + $0x20] ss:$8 sps:$4 sm:$0xff]  }
 0x276   :  { %v1654_v9 = vmax.f32 %v1572_v0, 0.0  ;;  %v2409_v17 = vpop.f32.mrb[96].mxu0 }
 0x277   :  { %v2410_v25 = vpop.f32.mrb[97].mxu0 }
 0x278   :  { %v3479_v55 = vpack.c.bf16 %v1654_v9, %v1653_v5  ;;  %v2411_v26 = vadd.f32 %v2410_v25, %v2409_v17  ;;  %v2412_v59 = vpop.f32.mrb[98].mxu0 }
 0x279   :  { %v2413_v29 = vpop.f32.mrb[99].mxu0 }
 0x27a   :  { %v1577_v28 = vadd.f32 %v2411_v26, %v1416_v1  ;;  %v2414_v52 = vadd.f32 %v2413_v29, %v2412_v59 }
 0x27c   :  { %v1580_v32 = vadd.f32 %v2414_v52, %v1419_v56  ;;  %v1655_v33 = vmax.f32 %v1577_v28, 0.0 }
 0x27e   :  { %v1656_v37 = vmax.f32 %v1580_v32, 0.0  ;;  %v2415_v42 = vpop.f32.mrb[100].mxu0 }
 0x27f   :  { %v2416_v49 = vpop.f32.mrb[101].mxu0 }
 0x280   :  { %v2417_v7 = vadd.f32 %v2416_v49, %v2415_v42  ;;  %v2418_v51 = vpop.f32.mrb[102].mxu0  ;;  %v1679_v60 = vpack.c.bf16 %v1656_v37, %v1655_v33 }
 0x281   :  { %v2419_v13 = vpop.f32.mrb[103].mxu0 }
 0x282   :  { %v1585_v38 = vadd.f32 %v2417_v7, %v1424_v2  ;;  %v2420_v39 = vadd.f32 %v2419_v13, %v2418_v51  ;;  %2457 = vmatprep.subr.bf16.mxu1 %v1679_v60 }
 0x283   :  { %2458 = vmatpush3.bf16.msra.mxu1 %v3403_v41 }
 0x284   :  { %v1588_v11 = vadd.f32 %v2420_v39, %v1427_v27  ;;  %v1657_v24 = vmax.f32 %v1585_v38, 0.0 }
 0x286   :  { %v1658_v61 = vmax.f32 %v1588_v11, 0.0  ;;  %v2421_v0 = vpop.f32.mrb[104].mxu0 }
 0x287   :  { %v2422_v1 = vpop.f32.mrb[105].mxu0 }
 0x288   :  { %v2423_v46 = vadd.f32 %v2422_v1, %v2421_v0  ;;  %v2424_v5 = vpop.f32.mrb[106].mxu0  ;;  %v1680_v9 = vpack.c.bf16 %v1658_v61, %v1657_v24 }
 0x289   :  { %v2425_v17 = vpop.f32.mrb[107].mxu0 }
 0x28a   :  { %v1593_v63 = vadd.f32 %v2423_v46, %v1432_v16  ;;  %v2426_v25 = vadd.f32 %v2425_v17, %v2424_v5  ;;  %2459 = vmatprep.subr.bf16.mxu1 %v1680_v9 }
 0x28b   :  { %2460 = vmatpush3.bf16.msra.mxu1 %v3417_v18 }
 0x28c   :  { %v1596_v41 = vadd.f32 %v2426_v25, %v1435_v19  ;;  %v1659_v26 = vmax.f32 %v1593_v63, 0.0 }
 0x28e   :  { %v1660_v59 = vmax.f32 %v1596_v41, 0.0  ;;  %v2427_v29 = vpop.f32.mrb[108].mxu0 }
 0x28f   :  { %v2428_v56 = vpop.f32.mrb[109].mxu0 }
 0x290   :  { %v2429_v21 = vadd.f32 %v2428_v56, %v2427_v29  ;;  %v2430_v28 = vpop.f32.mrb[110].mxu0  ;;  %v1681_v52 = vpack.c.bf16 %v1660_v59, %v1659_v26 }
 0x291   :  { %v2431_v32 = vpop.f32.mrb[111].mxu0 }
 0x292   :  { %v1601_v8 = vadd.f32 %v2429_v21, %v1440_v30  ;;  %v2432_v33 = vadd.f32 %v2431_v32, %v2430_v28  ;;  %2461 = vmatprep.subr.bf16.mxu1 %v1681_v52 }
 0x293   :  { %2462 = vmatpush3.bf16.msra.mxu1 %v3427_v36 }
 0x294   :  { %v1604_v18 = vadd.f32 %v2432_v33, %v1443_v31  ;;  %v1661_v37 = vmax.f32 %v1601_v8, 0.0  ;;  %v2760_v8 = vld [vmem:[%s3585_s4 + $0x30] ss:$8 sps:$4 sm:$0xff]   ;;  %v2761_v33 = vld [vmem:[%s3585_s4 + $0x44] ss:$8 sps:$4 sm:$0xff]  }
 0x296   :  { %v1662_v42 = vmax.f32 %v1604_v18, 0.0  ;;  %v2433_v49 = vpop.f32.mrb[112].mxu0  ;;  %v2763_v18 = vld [vmem:[%s3585_s4 + $0x40] ss:$8 sps:$4 sm:$0xff]  }
 0x297   :  { %v2434_v2 = vpop.f32.mrb[113].mxu0 }
 0x298   :  { %v2435_v40 = vadd.f32 %v2434_v2, %v2433_v49  ;;  %v2436_v7 = vpop.f32.mrb[114].mxu0  ;;  %v1682_v51 = vpack.c.bf16 %v1662_v42, %v1661_v37  ;;  %v2764_v37 = vld [vmem:[%s3585_s4 + $0x54] ss:$8 sps:$4 sm:$0xff]   ;;  %v2766_v42 = vld [vmem:[%s3585_s4 + $0x50] ss:$8 sps:$4 sm:$0xff]  }
 0x299   :  { %v2437_v60 = vpop.f32.mrb[115].mxu0  ;;  %v2767_v49 = vld [vmem:[%s3585_s4 + $0x64] ss:$8 sps:$4 sm:$0xff]   ;;  %v2769_v2 = vld [vmem:[%s3585_s4 + $0x60] ss:$8 sps:$4 sm:$0xff]  }
 0x29a   :  { %v1609_v48 = vadd.f32 %v2435_v40, %v1448_v43  ;;  %v2438_v13 = vadd.f32 %v2437_v60, %v2436_v7  ;;  %2463 = vmatprep.subr.bf16.mxu1 %v1682_v51  ;;  %v2770_v43 = vld [vmem:[%s3585_s4 + $0x74] ss:$8 sps:$4 sm:$0xff]   ;;  %v2772_v40 = vld [vmem:[%s3585_s4 + $0x70] ss:$8 sps:$4 sm:$0xff]   ;;  %v2774_v7 = vmov 0.0  }
 0x29b   :  { %2464 = vmatpush3.bf16.msra.mxu1 %v3441_v35 }
 0x29c   :  { %v1612_v36 = vadd.f32 %v2438_v13, %v1451_v20  ;;  %v1663_v27 = vmax.f32 %v1609_v48, 0.0  ;;  %v1722_v13 = vpop.permute.xlu0 %1721 }
 0x29e   :  { %v1664_v38 = vmax.f32 %v1612_v36, 0.0  ;;  %v2439_v39 = vpop.f32.mrb[116].mxu0 }
 0x29f   :  { %v2440_v11 = vpop.f32.mrb[117].mxu0 }
 0x2a0   :  { %v2441_v22 = vadd.f32 %v2440_v11, %v2439_v39  ;;  %v2442_v24 = vpop.f32.mrb[118].mxu0  ;;  %v1683_v61 = vpack.c.bf16 %v1664_v38, %v1663_v27  ;;  %v1727_v39 = vpop.permute.xlu1 %1726 }
 0x2a1   :  { %v2443_v0 = vpop.f32.mrb[119].mxu0 }
 0x2a2   :  { %v1617_v3 = vadd.f32 %v2441_v22, %v1456_v57  ;;  %v2444_v1 = vadd.f32 %v2443_v0, %v2442_v24  ;;  %2465 = vmatprep.subr.bf16.mxu1 %v1683_v61 }
 0x2a3   :  { %2466 = vmatpush3.bf16.msra.mxu1 %v3450_v10 }
 0x2a4   :  { %v1620_v35 = vadd.f32 %v2444_v1, %v1459_v58  ;;  %v1665_v16 = vmax.f32 %v1617_v3, 0.0  ;;  %v1732_v1 = vpop.permute.xlu0 %1731 }
 0x2a6   :  { %v1666_v46 = vmax.f32 %v1620_v35, 0.0  ;;  %v2445_v5 = vpop.f32.mrb[120].mxu0 }
 0x2a7   :  { %v2446_v9 = vpop.f32.mrb[121].mxu0 }
 0x2a8   :  { %v2447_v4 = vadd.f32 %v2446_v9, %v2445_v5  ;;  %v2448_v17 = vpop.f32.mrb[122].mxu0  ;;  %v1684_v19 = vpack.c.bf16 %v1666_v46, %v1665_v16  ;;  %v1737_v5 = vpop.permute.xlu1 %1736 }
 0x2a9   :  { %v2449_v63 = vpop.f32.mrb[123].mxu0 }
 0x2aa   :  { %v1625_v34 = vadd.f32 %v2447_v4, %v1464_v54  ;;  %v2450_v25 = vadd.f32 %v2449_v63, %v2448_v17  ;;  %2467 = vmatprep.subr.bf16.mxu1 %v1684_v19 }
 0x2ab   :  { %2468 = vmatpush3.bf16.msra.mxu1 %v3462_v23 }
 0x2ac   :  { %v1628_v10 = vadd.f32 %v2450_v25, %v1467_v62  ;;  %v1667_v41 = vmax.f32 %v1625_v34, 0.0  ;;  %v1742_v25 = vpop.permute.xlu0 %1741 }
 0x2ae   :  { %v1668_v26 = vmax.f32 %v1628_v10, 0.0  ;;  %v2451_v59 = vpop.f32.mrb[124].mxu0 }
 0x2af   :  { %v2452_v29 = vpop.f32.mrb[125].mxu0 }
 0x2b0   :  { %v2453_v12 = vadd.f32 %v2452_v29, %v2451_v59  ;;  %v2454_v56 = vpop.f32.mrb[126].mxu0  ;;  %v1685_v30 = vpack.c.bf16 %v1668_v26, %v1667_v41  ;;  %v1747_v59 = vpop.permute.xlu1 %1746 }
 0x2b1   :  { %v2455_v21 = vpop.f32.mrb[127].mxu0 }
 0x2b2   :  { %v1633_v45 = vadd.f32 %v2453_v12, %v1472_v14  ;;  %v2456_v28 = vadd.f32 %v2455_v21, %v2454_v56  ;;  %2469 = vmatprep.subr.bf16.mxu1 %v1685_v30 }
 0x2b3   :  { %2470 = vmatpush3.bf16.msra.mxu1 %v3470_v44  ;;  %v2754_v44 = vld [vmem:[%s3585_s4 + $0x10] ss:$8 sps:$4 sm:$0xff]  }
 0x2b4   :  { %v1636_v23 = vadd.f32 %v2456_v28, %v1475_v15  ;;  %v1669_v52 = vmax.f32 %v1633_v45, 0.0  ;;  %v1752_v28 = vpop.permute.xlu0 %1751 }
 0x2b6   :  { %v1670_v32 = vmax.f32 %v1636_v23, 0.0 }
 0x2b8   :  { %v1686_v31 = vpack.c.bf16 %v1670_v32, %v1669_v52 }
 0x2ba   :  { %2471 = vmatprep.subr.bf16.mxu1 %v1686_v31  ;;  %v1757_v31 = vpop.permute.xlu1 %1756 }
 0x2bb   :  { %2472 = vmatpush3.bf16.msra.mxu1 %v3479_v55  ;;  %v2758_v55 = vld [vmem:[%s3585_s4 + $0x34] ss:$8 sps:$4 sm:$0xff]  }
 0x2bc   :  { %2596 = vmatprep.subr.bf16.mxu1 %v2774_v7 }
 0x2be   :  { %1912 = vmatmul.mubr.bf16.vlgmr.msra.gmra.mrb[64].mxu1 %v2749_v6 }
 0x2bf   :  { %1919 = vmatprep.mubr.bf16.mxu1 %v2752_v50 }
 0x2c6   :  { %1920 = vmatmul.mubr.bf16.gmra.mrb[68].mxu1 %v2754_v44 }
 0x2c7   :  { %1927 = vmatprep.mubr.bf16.mxu1 %v2755_v47 }
 0x2ce   :  { %1928 = vmatmul.mubr.bf16.gmra.mrb[72].mxu1 %v2757_v53 }
 0x2cf   :  { %1935 = vmatprep.mubr.bf16.mxu1 %v2758_v55 }
 0x2d6   :  { %1936 = vmatmul.mubr.bf16.gmra.mrb[76].mxu1 %v2760_v8 }
 0x2d7   :  { %1943 = vmatprep.mubr.bf16.mxu1 %v2761_v33 }
 0x2de   :  { %1944 = vmatmul.mubr.bf16.gmra.mrb[80].mxu1 %v2763_v18  ;;  %v1762_v18 = vpop.permute.xlu0 %1761 }
 0x2df   :  { %1951 = vmatprep.mubr.bf16.mxu1 %v2764_v37 }
 0x2e6   :  { %1952 = vmatmul.mubr.bf16.gmra.mrb[84].mxu1 %v2766_v42 }
 0x2e7   :  { %1959 = vmatprep.mubr.bf16.mxu1 %v2767_v49 }
 0x2ee   :  { %1960 = vmatmul.mubr.bf16.gmra.mrb[88].mxu1 %v2769_v2  ;;  %v1767_v2 = vpop.permute.xlu1 %1766 }
 0x2ef   :  { %1967 = vmatprep.mubr.bf16.mxu1 %v2770_v43 }
 0x2f6   :  { %1968 = vmatmul.mubr.bf16.gmra.mrb[92].mxu1 %v2772_v40 }
 0x2f7   :  { %2612 = vmatprep.mubr.msk.bf16.mxu1 %vm2775_vm1, %v2774_v7 }
 0x391   :  { %v2473_v51 = vpop.f32.mrb[64].mxu1 }
 0x392   :  { %v2474_v60 = vpop.f32.mrb[65].mxu1 }
 0x393   :  { %v2475_v20 = vadd.f32 %v2474_v60, %v2473_v51  ;;  %v2476_v48 = vpop.f32.mrb[66].mxu1 }
 0x394   :  { %v2477_v36 = vpop.f32.mrb[67].mxu1 }
 0x395   :  { %v1914_v27 = vadd.f32 %v2475_v20, %v1722_v13  ;;  %v2478_v38 = vadd.f32 %v2477_v36, %v2476_v48 }
 0x397   :  { %v1917_v11 = vadd.f32 %v2478_v38, %v1727_v39  ;;  %v1976_v57 = vmax.f32 %v1914_v27, 0.0  ;;  %v1772_v27 = vpop.permute.xlu0 %1771 }
 0x399   :  { %v1977_v22 = vmax.f32 %v1917_v11, 0.0  ;;  %v2479_v24 = vpop.f32.mrb[68].mxu1 }
 0x39a   :  { %v2480_v61 = vpop.f32.mrb[69].mxu1 }
 0x39b   :  { %v1992_v0 = vpack.c.bf16 %v1977_v22, %v1976_v57  ;;  %v2481_v58 = vadd.f32 %v2480_v61, %v2479_v24  ;;  %v2482_v3 = vpop.f32.mrb[70].mxu1  ;;  %v1777_v57 = vpop.permute.xlu1 %1776 }
 0x39c   :  { %v2483_v35 = vpop.f32.mrb[71].mxu1 }
 0x39d   :  { %v1922_v16 = vadd.f32 %v2481_v58, %v1732_v1  ;;  %v2484_v46 = vadd.f32 %v2483_v35, %v2482_v3  ;;  %2597 = vmatpush3.bf16.msra.mxu1 %v1992_v0 }
 0x39e   :  { %2598 = vmatprep.subr.bf16.mxu1 %v2774_v7 }
 0x39f   :  { %v1925_v9 = vadd.f32 %v2484_v46, %v1737_v5  ;;  %v1978_v54 = vmax.f32 %v1922_v16, 0.0  ;;  %v1782_v16 = vpop.permute.xlu0 %1781 }
 0x3a1   :  { %v1979_v4 = vmax.f32 %v1925_v9, 0.0  ;;  %v2485_v17 = vpop.f32.mrb[72].mxu1 }
 0x3a2   :  { %v2486_v19 = vpop.f32.mrb[73].mxu1 }
 0x3a3   :  { %v1993_v63 = vpack.c.bf16 %v1979_v4, %v1978_v54  ;;  %v2487_v62 = vadd.f32 %v2486_v19, %v2485_v17  ;;  %v2488_v34 = vpop.f32.mrb[74].mxu1  ;;  %v1787_v54 = vpop.permute.xlu1 %1786 }
 0x3a4   :  { %v2489_v10 = vpop.f32.mrb[75].mxu1 }
 0x3a5   :  { %v1930_v41 = vadd.f32 %v2487_v62, %v1742_v25  ;;  %v2490_v26 = vadd.f32 %v2489_v10, %v2488_v34  ;;  %2599 = vmatpush3.bf16.msra.mxu1 %v1993_v63 }
 0x3a6   :  { %2600 = vmatprep.subr.bf16.mxu1 %v2774_v7 }
 0x3a7   :  { %v1933_v29 = vadd.f32 %v2490_v26, %v1747_v59  ;;  %v1980_v14 = vmax.f32 %v1930_v41, 0.0  ;;  %v1792_v41 = vpop.permute.xlu0 %1791 }
 0x3a9   :  { %v1981_v12 = vmax.f32 %v1933_v29, 0.0  ;;  %v2491_v56 = vpop.f32.mrb[76].mxu1 }
 0x3aa   :  { %v2492_v30 = vpop.f32.mrb[77].mxu1 }
 0x3ab   :  { %v1994_v21 = vpack.c.bf16 %v1981_v12, %v1980_v14  ;;  %v2493_v15 = vadd.f32 %v2492_v30, %v2491_v56  ;;  %v2494_v45 = vpop.f32.mrb[78].mxu1  ;;  %v1797_v14 = vpop.permute.xlu1 %1796 }
 0x3ac   :  { %v2495_v23 = vpop.f32.mrb[79].mxu1 }
 0x3ad   :  { %v1938_v52 = vadd.f32 %v2493_v15, %v1752_v28  ;;  %v2496_v32 = vadd.f32 %v2495_v23, %v2494_v45  ;;  %2601 = vmatpush3.bf16.msra.mxu1 %v1994_v21  ;;  %v2000_v15 = vld [vmem:[%s3586_s6] sm:$0x1]  ;;  %v2007_v45 = vlaneseq }
 0x3ae   :  { %2602 = vmatprep.subr.bf16.mxu1 %v2774_v7 }
 0x3af   :  { %v1941_v6 = vadd.f32 %v2496_v32, %v1757_v31  ;;  %v1982_v50 = vmax.f32 %v1938_v52, 0.0  ;;  %v2008_v28 = vshrl.u32 %v2007_v45, 7  ;;  %v2005_v52 = vpop.permute.xlu0 %2004 }
 0x3b1   :  { %v1983_v44 = vmax.f32 %v1941_v6, 0.0  ;;  %v2497_v47 = vpop.f32.mrb[80].mxu1  ;;  %v2009_v23 = vsub.s32 0, %v2008_v28 }
 0x3b2   :  { %v2498_v53 = vpop.f32.mrb[81].mxu1 }
 0x3b3   :  { %v1995_v55 = vpack.c.bf16 %v1983_v44, %v1982_v50  ;;  %v2499_v8 = vadd.f32 %v2498_v53, %v2497_v47  ;;  %v2500_v33 = vpop.f32.mrb[82].mxu1  ;;  %v2010_v32 = vrot.slane %v2005_v52, %v2009_v23 }
 0x3b4   :  { %v2501_v37 = vpop.f32.mrb[83].mxu1 }
 0x3b5   :  { %v1946_v42 = vadd.f32 %v2499_v8, %v1762_v18  ;;  %v2502_v49 = vadd.f32 %v2501_v37, %v2500_v33  ;;  %2603 = vmatpush3.bf16.msra.mxu1 %v1995_v55 }
 0x3b6   :  { %2604 = vmatprep.subr.bf16.mxu1 %v2774_v7 }
 0x3b7   :  { %v1949_v43 = vadd.f32 %v2502_v49, %v1767_v2  ;;  %v1984_v40 = vmax.f32 %v1946_v42, 0.0 }
 0x3b9   :  { %v1985_v51 = vmax.f32 %v1949_v43, 0.0  ;;  %v2503_v60 = vpop.f32.mrb[84].mxu1 }
 0x3ba   :  { %v2504_v20 = vpop.f32.mrb[85].mxu1 }
 0x3bb   :  { %v1996_v48 = vpack.c.bf16 %v1985_v51, %v1984_v40  ;;  %v2505_v13 = vadd.f32 %v2504_v20, %v2503_v60  ;;  %v2506_v36 = vpop.f32.mrb[86].mxu1 }
 0x3bc   :  { %v2507_v38 = vpop.f32.mrb[87].mxu1 }
 0x3bd   :  { %v1954_v39 = vadd.f32 %v2505_v13, %v1772_v27  ;;  %v2508_v11 = vadd.f32 %v2507_v38, %v2506_v36  ;;  %2605 = vmatpush3.bf16.msra.mxu1 %v1996_v48 }
 0x3be   :  { %2606 = vmatprep.subr.bf16.mxu1 %v2774_v7 }
 0x3bf   :  { %v1957_v22 = vadd.f32 %v2508_v11, %v1777_v57  ;;  %v1986_v24 = vmax.f32 %v1954_v39, 0.0 }
 0x3c1   :  { %v1987_v61 = vmax.f32 %v1957_v22, 0.0  ;;  %v2509_v0 = vpop.f32.mrb[88].mxu1 }
 0x3c2   :  { %v2510_v58 = vpop.f32.mrb[89].mxu1 }
 0x3c3   :  { %v1997_v3 = vpack.c.bf16 %v1987_v61, %v1986_v24  ;;  %v2511_v1 = vadd.f32 %v2510_v58, %v2509_v0  ;;  %v2512_v35 = vpop.f32.mrb[90].mxu1 }
 0x3c4   :  { %v2513_v46 = vpop.f32.mrb[91].mxu1 }
 0x3c5   :  { %v1962_v5 = vadd.f32 %v2511_v1, %v1782_v16  ;;  %v2514_v9 = vadd.f32 %v2513_v46, %v2512_v35  ;;  %2607 = vmatpush3.bf16.msra.mxu1 %v1997_v3 }
 0x3c6   :  { %2608 = vmatprep.subr.bf16.mxu1 %v2774_v7 }
 0x3c7   :  { %v1965_v4 = vadd.f32 %v2514_v9, %v1787_v54  ;;  %v1988_v17 = vmax.f32 %v1962_v5, 0.0 }
 0x3c9   :  { %v1989_v19 = vmax.f32 %v1965_v4, 0.0  ;;  %v2515_v63 = vpop.f32.mrb[92].mxu1 }
 0x3ca   :  { %v2516_v62 = vpop.f32.mrb[93].mxu1 }
 0x3cb   :  { %v1998_v34 = vpack.c.bf16 %v1989_v19, %v1988_v17  ;;  %v2517_v25 = vadd.f32 %v2516_v62, %v2515_v63  ;;  %v2518_v10 = vpop.f32.mrb[94].mxu1 }
 0x3cc   :  { %v2519_v26 = vpop.f32.mrb[95].mxu1 }
 0x3cd   :  { %v1970_v59 = vadd.f32 %v2517_v25, %v1792_v41  ;;  %v2520_v29 = vadd.f32 %v2519_v26, %v2518_v10  ;;  %2609 = vmatpush3.bf16.msra.mxu1 %v1998_v34 }
 0x3ce   :  { %2610 = vmatprep.subr.bf16.mxu1 %v2774_v7 }
 0x3cf   :  { %v1973_v12 = vadd.f32 %v2520_v29, %v1797_v14  ;;  %v1990_v56 = vmax.f32 %v1970_v59, 0.0 }
 0x3d1   :  { %v1991_v30 = vmax.f32 %v1973_v12, 0.0 }
 0x3d3   :  { %v1999_v21 = vpack.c.bf16 %v1991_v30, %v1990_v56 }
 0x3d5   :  { %2611 = vmatpush3.bf16.msra.mxu1 %v1999_v21 }
 0x3d8   :  { %2613 = vmatmul.mubr.bf16.vlgmr.msra.gmra.mrb[96].mxu1 %v2000_v15 }
 0x4ab   :  { %v2045_v31 = vpop.f32.mrb[96].mxu1 }
 0x4ac   :  { %v2046_v6 = vadd.f32 %v2045_v31, %v2010_v32  ;;  %v2614_v50 = vpop.f32.mrb[97].mxu1 }
 0x4ad   :  { %v2048_v44 = vpop.f32.mrb[98].mxu1 }
 0x4ae   :  { %2051 = vst [vmem:[%s3587_s8] sm:$0x1] %v2046_v6  ;;  %v2615_v7 = vpop.f32.mrb[99].mxu1 }

</bundles_post_ra>
